<compile_context>
chip_gen: v5e
topology: v5e:2x2
jax: 0.10.0
libtpu: 0.0.40
codegen_flags: <defaults>
</compile_context>

<pallas_src>
import jax
import jax.numpy as jnp
from jax import lax
from jax.experimental import pallas as pl
from jax.experimental.pallas import tpu as pltpu

FEATS = 64                 # per-branch stem feature width (simplified backbone)
NF = 2 * FEATS             # fused two-branch feature width = 128
KPAD = 64                  # im2col contraction: 27*C = 54, zero-padded to 64
PAIR_K = 2 * KPAD          # lane-dense paired-row contraction dim = 128
PAIR_W = 2 * NF            # fused output width for paired rows = 256
N_T2, N_T1 = 15, 30
BN_EPS = 1e-5
CHUNK = 512                # rows per inner sub-matmul (bounds vreg pressure)


# ----------------------------------------------------------------------------- kernel
def _make_stem_kernel(chunk: int, n_chunks: int):
    def kernel(patches_ref, wbd_ref, shift_ref, out_ref, acc_ref):
        s = pl.program_id(1)

        @pl.when(s == 0)
        def _():
            acc_ref[...] = jnp.zeros_like(acc_ref)

        w = wbd_ref[...]        # (128, 256) bf16 block-diag conv W, hoisted out of loop
        sh = shift_ref[...]     # (1, 256) f32 folded conv-bias + eval-BN shift

        def body(ci, carry):
            r0 = pl.multiple_of(ci * chunk, chunk)
            p = patches_ref[0, pl.ds(r0, chunk), :]                   # (chunk,128) bf16
            h = jnp.dot(p, w, preferred_element_type=jnp.float32)     # MXU -> (chunk,256) f32
            h = jnp.maximum(h + sh, 0.0)                              # shift + ReLU (VPU)
            # partial GAP: aligned sublane-tile adds only (no cross-sublane reduce)
            return carry + jnp.sum(h.reshape(chunk // 8, 8, PAIR_W), axis=0)

        part = lax.fori_loop(0, n_chunks, body,
                             jnp.zeros((8, PAIR_W), jnp.float32), unroll=True)
        acc_ref[...] += part

        @pl.when(s == pl.num_programs(1) - 1)
        def _():
            out_ref[0] = acc_ref[...]     # lane-dense (8, 256) partial sums per batch
    return kernel


def _pick_s_tile(s2: int) -> int:
    # Prefer ~0.5-1 MiB bf16 tiles (amortize per-grid-step overhead); must divide S/2.
    for ts in (4096, 2048, 1024, 512, 256, 128, 64, 32, 16, 8):
        if s2 % ts == 0:
            return ts
    return s2


def run_fused_stem(patches_pairs, wbd, shift2):
    """patches_pairs: (B, S/2, 128) bf16 -> (B, 8, 256) f32 partial GAP sums."""
    B, S2, K2 = patches_pairs.shape
    assert K2 == PAIR_K
    ts = _pick_s_tile(S2)
    assert ts % 8 == 0 and S2 % ts == 0, "S/2 must be a multiple of 8"
    if ts % CHUNK == 0 and ts > CHUNK:
        chunk, n_chunks = CHUNK, ts // CHUNK
    else:
        chunk, n_chunks = ts, 1

    return pl.pallas_call(
        _make_stem_kernel(chunk, n_chunks),
        out_shape=jax.ShapeDtypeStruct((B, 8, PAIR_W), jnp.float32),
        grid_spec=pltpu.PrefetchScalarGridSpec(
            num_scalar_prefetch=0,
            grid=(B, S2 // ts),
            in_specs=[
                pl.BlockSpec((1, ts, PAIR_K), lambda b, s: (b, s, 0)),   # patches tile
                pl.BlockSpec((PAIR_K, PAIR_W), lambda b, s: (0, 0)),     # block-diag conv W
                pl.BlockSpec((1, PAIR_W), lambda b, s: (0, 0)),          # folded shift
            ],
            out_specs=pl.BlockSpec((1, 8, PAIR_W), lambda b, s: (b, 0, 0)),
            scratch_shapes=[pltpu.VMEM((8, PAIR_W), jnp.float32)],
        ),
        compiler_params=pltpu.CompilerParams(
            dimension_semantics=("parallel", "arbitrary"),
            vmem_limit_bytes=32 * 1024 * 1024),
    )(patches_pairs, wbd, shift2)


# ------------------------------------------------------------------------ preprocessing
def im2col_3d(xcl, out_dtype):
    """xcl: (B,H,W,D,C). 3x3x3 kernel, stride 1, pad 1 -> (B, H*W*D, KPAD)."""
    B, H, W, D, C = xcl.shape
    # Cast BEFORE pad/stack so every 27-slice intermediate is bf16 (halves HBM traffic).
    xp = jnp.pad(xcl.astype(out_dtype), ((0, 0), (1, 1), (1, 1), (1, 1), (0, 0)))
    cols = []
    for kh in range(3):
        for kw in range(3):
            for kd in range(3):
                cols.append(xp[:, kh:kh + H, kw:kw + W, kd:kd + D, :])
    # Flattening order (kh, kw, kd, c) must match the row order used for wconv
    # (and any imported PyTorch Conv3d weights).
    patches = jnp.stack(cols, axis=4).reshape(B, H * W * D, 27 * C)
    return jnp.pad(patches, ((0, 0), (0, 0), (0, KPAD - 27 * C)))


# ----------------------------------------------------------------------------- params
def init_branch_params(key, in_chans, num_classes):
    ks = jax.random.split(key, 8)
    kdim = 27 * in_chans
    wconv = jnp.zeros((KPAD, FEATS), jnp.float32).at[:kdim].set(
        0.02 * jax.random.normal(ks[0], (kdim, FEATS), jnp.float32))
    return dict(
        wconv=wconv,
        bconv=0.02 * jax.random.normal(ks[1], (1, FEATS), jnp.float32),
        gamma=1.0 + 0.02 * jax.random.normal(ks[2], (1, FEATS), jnp.float32),
        beta=0.02 * jax.random.normal(ks[3], (1, FEATS), jnp.float32),
        running_mean=0.1 * jax.random.normal(ks[4], (1, FEATS), jnp.float32),
        running_var=1.0 + 0.1 * jax.random.uniform(ks[5], (1, FEATS), jnp.float32),
        whead=0.02 * jax.random.normal(ks[6], (FEATS, num_classes), jnp.float32),
        bhead=0.02 * jax.random.normal(ks[7], (1, num_classes), jnp.float32),
    )


def fuse_params(p_t2, p_t1):
    """Faithful eval-mode BN fold into the conv, pack both branches, then build the
    even/odd row-pair block-diagonal (128, 256) operand + (1, 256) shift."""
    def fold(p):
        scale = p["gamma"] / jnp.sqrt(p["running_var"] + BN_EPS)
        return p["wconv"] * scale, (p["bconv"] - p["running_mean"]) * scale + p["beta"]
    w2, s2 = fold(p_t2)
    w1, s1 = fold(p_t1)
    wc = jnp.concatenate([w2, w1], axis=1)                         # (64, 128) f32
    sh = jnp.concatenate([s2, s1], axis=1)                         # (1, 128)  f32
    wbd = jnp.zeros((PAIR_K, PAIR_W), jnp.float32)
    wbd = wbd.at[:KPAD, :NF].set(wc).at[KPAD:, NF:].set(wc)        # [[W, 0], [0, W]]
    shift2 = jnp.concatenate([sh, sh], axis=1)                     # (1, 256)  f32
    return wbd.astype(jnp.bfloat16), shift2


# ----------------------------------------------------------------------------- forward
@jax.jit
def forward(x, params_t2, params_t1):
    """x: (B, C=2, D, H, W) NCDHW. Returns (B, 45) = cat(t2, t1)."""
    B, C, D, H, W = x.shape
    S = H * W * D
    xperm = jnp.transpose(x, (0, 1, 3, 4, 2))     # torch permute(0,1,3,4,2): (B,C,H,W,D)
    xcl = jnp.transpose(xperm, (0, 2, 3, 4, 1))   # channels-last (B,H,W,D,C)
    patches = im2col_3d(xcl, jnp.bfloat16)        # (B, S, 64) bf16
    patches = patches.reshape(B, S // 2, PAIR_K)  # free reshape -> lane-dense LHS
    wbd, shift2 = fuse_params(params_t2, params_t1)
    part = run_fused_stem(patches, wbd, shift2)   # (B, 8, 256) f32 partial sums
    # Finalize GAP (8 sublanes x even/odd halves) + tiny heads in XLA.
    pooled = part.reshape(B, 8, 2, NF).sum(axis=(1, 2)) * (1.0 / S)      # (B, 128)
    t2 = pooled[:, :FEATS] @ params_t2["whead"] + params_t2["bhead"][0]
    t1 = pooled[:, FEATS:] @ params_t1["whead"] + params_t1["bhead"][0]
    return jnp.concatenate([t2, t1], axis=-1)


# --------------------------------------------------------------------------- reference
def _branch_ref(patches_f32, prm):
    """Pure-JAX f32 reference of one (unfused) branch with eval-mode BN."""
    h = patches_f32 @ prm["wconv"] + prm["bconv"]
    h = (h - prm["running_mean"]) * (prm["gamma"] /
        jnp.sqrt(prm["running_var"] + BN_EPS)) + prm["beta"]
    h = jnp.maximum(h, 0.0)
    pooled = jnp.mean(h, axis=1)
    return pooled @ prm["whead"] + prm["bhead"]


if __name__ == "__main__":
    key = jax.random.PRNGKey(0)
    kx, kt2, kt1 = jax.random.split(key, 3)

    B, C, D, H, W = 2, 2, 8, 16, 16              # small NCDHW input
    x = jax.random.normal(kx, (B, C, D, H, W), jnp.float32)

    params_t2 = init_branch_params(kt2, in_chans=C, num_classes=N_T2)
    params_t1 = init_branch_params(kt1, in_chans=C, num_classes=N_T1)

    out = jax.block_until_ready(forward(x, params_t2, params_t1))
    assert out.shape == (B, N_T2 + N_T1) and out.dtype == jnp.float32

    # Sanity check against a full-precision, per-branch reference of the same math.
    xcl = jnp.transpose(jnp.transpose(x, (0, 1, 3, 4, 2)), (0, 2, 3, 4, 1))
    patches_f32 = im2col_3d(xcl, jnp.float32)
    ref = jnp.concatenate((_branch_ref(patches_f32, params_t2),
                           _branch_ref(patches_f32, params_t1)), axis=-1)
    assert jnp.allclose(out, ref, rtol=5e-2, atol=5e-3), "mismatch vs reference"

    print("KERNEL_OK")
</pallas_src>

<mosaic_0001>
module attributes {stable_mosaic.version = 11 : i64} {
  func.func @kernel(%arg0: i32, %arg1: i32, %arg2: memref<1x1024x128xbf16, #tpu.memory_space<vmem>>, %arg3: memref<128x256xbf16, #tpu.memory_space<vmem>>, %arg4: memref<1x256xf32, #tpu.memory_space<vmem>>, %arg5: memref<1x8x256xf32, #tpu.memory_space<vmem>>, %arg6: memref<8x256xf32, #tpu.memory_space<vmem>>) attributes {dimension_semantics = [#tpu.dimension_semantics<parallel>, #tpu.dimension_semantics<arbitrary>], iteration_bounds = array<i64: 2, 1>, scalar_prefetch = 0 : i64, scratch_operands = 1 : i64, tpu.core_type = #tpu.core_type<tc>, window_params = [{transform_indices = @transform_0, window_bounds = array<i64: 1, 1024, 128>}, {pipeline_mode = #tpu.pipeline_mode<synchronous>, transform_indices = @transform_1, window_bounds = array<i64: 128, 256>}, {pipeline_mode = #tpu.pipeline_mode<synchronous>, transform_indices = @transform_2, window_bounds = array<i64: 1, 256>}, {transform_indices = @transform_3, window_bounds = array<i64: 1, 8, 256>}]} {
    %c0_i32 = arith.constant 0 : i32
    %0 = arith.cmpi eq, %arg1, %c0_i32 : i32
    %1 = arith.extui %0 : i1 to i32
    %c0_i32_0 = arith.constant 0 : i32
    %2 = arith.cmpi ne, %1, %c0_i32_0 : i32
    scf.if %2 {
      %cst_22 = arith.constant 0.000000e+00 : f32
      %38 = vector.broadcast %cst_22 : f32 to vector<8x256xf32>
      %c0_23 = arith.constant 0 : index
      %c0_24 = arith.constant 0 : index
      %39 = vector.load %arg6[%c0_23, %c0_24] : memref<8x256xf32, #tpu.memory_space<vmem>>, vector<8x256xf32>
      tpu.vector_store %arg6[%c0_23, %c0_24], %38 {strides = array<i32>} : memref<8x256xf32, #tpu.memory_space<vmem>>, vector<8x256xf32>,
    } else {
    }
    %c0 = arith.constant 0 : index
    %c0_1 = arith.constant 0 : index
    %3 = vector.load %arg3[%c0, %c0_1] : memref<128x256xbf16, #tpu.memory_space<vmem>>, vector<128x256xbf16>
    %c0_2 = arith.constant 0 : index
    %c0_3 = arith.constant 0 : index
    %4 = vector.load %arg4[%c0_2, %c0_3] : memref<1x256xf32, #tpu.memory_space<vmem>>, vector<1x256xf32>
    %cst = arith.constant 0.000000e+00 : f32
    %5 = vector.broadcast %cst : f32 to vector<8x256xf32>
    %c0_i32_4 = arith.constant 0 : i32
    %c512_i32 = arith.constant 512 : i32
    %6 = arith.muli %c0_i32_4, %c512_i32 : i32
    %7 = tpu.assume_multiple %6, 512 : i32
    %c0_5 = arith.constant 0 : index
    %8 = arith.index_cast %7 : i32 to index
    %c0_6 = arith.constant 0 : index
    %9 = vector.load %arg2[%c0_5, %8, %c0_6] : memref<1x1024x128xbf16, #tpu.memory_space<vmem>>, vector<1x512x128xbf16>
    %10 = vector.shape_cast %9 : vector<1x512x128xbf16> to vector<512x128xbf16>
    %cst_7 = arith.constant dense<0.000000e+00> : vector<512x256xf32>
    %11 = tpu.matmul %10, %3, %cst_7 {dimension_numbers = #tpu.dot_dimension_numbers<[1], [0], [0], [1], [0, 0, 1, 1], [], []>} : vector<512x128xbf16>, vector<128x256xbf16>, vector<512x256xf32> -> vector<512x256xf32>
    %12 = vector.broadcast %4 : vector<1x256xf32> to vector<512x256xf32>
    %13 = arith.addf %11, %12 : vector<512x256xf32>
    %cst_8 = arith.constant 0.000000e+00 : f32
    %14 = vector.broadcast %cst_8 : f32 to vector<512x256xf32>
    %15 = arith.maximumf %13, %14 : vector<512x256xf32>
    %16 = vector.shape_cast %15 : vector<512x256xf32> to vector<64x8x256xf32>
    %cst_9 = arith.constant dense<0.000000e+00> : vector<8x256xf32>
    %17 = vector.multi_reduction <add>, %16, %cst_9 [0] : vector<64x8x256xf32> to vector<8x256xf32>
    %18 = arith.addf %5, %17 : vector<8x256xf32>
    %c1_i32 = arith.constant 1 : i32
    %c512_i32_10 = arith.constant 512 : i32
    %19 = arith.muli %c1_i32, %c512_i32_10 : i32
    %20 = tpu.assume_multiple %19, 512 : i32
    %c0_11 = arith.constant 0 : index
    %21 = arith.index_cast %20 : i32 to index
    %c0_12 = arith.constant 0 : index
    %22 = vector.load %arg2[%c0_11, %21, %c0_12] : memref<1x1024x128xbf16, #tpu.memory_space<vmem>>, vector<1x512x128xbf16>
    %23 = vector.shape_cast %22 : vector<1x512x128xbf16> to vector<512x128xbf16>
    %cst_13 = arith.constant dense<0.000000e+00> : vector<512x256xf32>
    %24 = tpu.matmul %23, %3, %cst_13 {dimension_numbers = #tpu.dot_dimension_numbers<[1], [0], [0], [1], [0, 0, 1, 1], [], []>} : vector<512x128xbf16>, vector<128x256xbf16>, vector<512x256xf32> -> vector<512x256xf32>
    %25 = vector.broadcast %4 : vector<1x256xf32> to vector<512x256xf32>
    %26 = arith.addf %24, %25 : vector<512x256xf32>
    %cst_14 = arith.constant 0.000000e+00 : f32
    %27 = vector.broadcast %cst_14 : f32 to vector<512x256xf32>
    %28 = arith.maximumf %26, %27 : vector<512x256xf32>
    %29 = vector.shape_cast %28 : vector<512x256xf32> to vector<64x8x256xf32>
    %cst_15 = arith.constant dense<0.000000e+00> : vector<8x256xf32>
    %30 = vector.multi_reduction <add>, %29, %cst_15 [0] : vector<64x8x256xf32> to vector<8x256xf32>
    %31 = arith.addf %18, %30 : vector<8x256xf32>
    %c2_i32 = arith.constant 2 : i32
    %c0_16 = arith.constant 0 : index
    %c0_17 = arith.constant 0 : index
    %32 = vector.load %arg6[%c0_16, %c0_17] : memref<8x256xf32, #tpu.memory_space<vmem>>, vector<8x256xf32>
    %33 = arith.addf %32, %31 : vector<8x256xf32>
    %c0_18 = arith.constant 0 : index
    %c0_19 = arith.constant 0 : index
    %34 = vector.load %arg6[%c0_18, %c0_19] : memref<8x256xf32, #tpu.memory_space<vmem>>, vector<8x256xf32>
    tpu.vector_store %arg6[%c0_18, %c0_19], %33 {strides = array<i32>} : memref<8x256xf32, #tpu.memory_space<vmem>>, vector<8x256xf32>,
    %c0_i32_20 = arith.constant 0 : i32
    %35 = arith.cmpi eq, %arg1, %c0_i32_20 : i32
    %36 = arith.extui %35 : i1 to i32
    %c0_i32_21 = arith.constant 0 : i32
    %37 = arith.cmpi ne, %36, %c0_i32_21 : i32
    scf.if %37 {
      %c0_22 = arith.constant 0 : index
      %c0_23 = arith.constant 0 : index
      %38 = vector.load %arg6[%c0_22, %c0_23] : memref<8x256xf32, #tpu.memory_space<vmem>>, vector<8x256xf32>
      %c0_24 = arith.constant 0 : index
      %c0_25 = arith.constant 0 : index
      %c0_26 = arith.constant 0 : index
      %39 = vector.load %arg5[%c0_24, %c0_25, %c0_26] : memref<1x8x256xf32, #tpu.memory_space<vmem>>, vector<1x8x256xf32>
      %40 = vector.shape_cast %39 : vector<1x8x256xf32> to vector<8x256xf32>
      %41 = vector.shape_cast %38 : vector<8x256xf32> to vector<1x8x256xf32>
      tpu.vector_store %arg5[%c0_24, %c0_25, %c0_26], %41 {strides = array<i32>} : memref<1x8x256xf32, #tpu.memory_space<vmem>>, vector<1x8x256xf32>,
    } else {
    }
    return
  }
  func.func @transform_0(%arg0: i32, %arg1: i32) -> (i32, i32, i32) {
    %c0_i32 = arith.constant 0 : i32
    %c0_i32_0 = arith.constant 0 : i32
    return %arg0, %arg1, %c0_i32 : i32, i32, i32
  }
  func.func @transform_1(%arg0: i32, %arg1: i32) -> (i32, i32) {
    %c0_i32 = arith.constant 0 : i32
    %c0_i32_0 = arith.constant 0 : i32
    %c0_i32_1 = arith.constant 0 : i32
    return %c0_i32, %c0_i32_0 : i32, i32
  }
  func.func @transform_2(%arg0: i32, %arg1: i32) -> (i32, i32) {
    %c0_i32 = arith.constant 0 : i32
    %c0_i32_0 = arith.constant 0 : i32
    %c0_i32_1 = arith.constant 0 : i32
    return %c0_i32, %c0_i32_0 : i32, i32
  }
  func.func @transform_3(%arg0: i32, %arg1: i32) -> (i32, i32, i32) {
    %c0_i32 = arith.constant 0 : i32
    %c0_i32_0 = arith.constant 0 : i32
    %c0_i32_1 = arith.constant 0 : i32
    return %arg0, %c0_i32, %c0_i32_0 : i32, i32, i32
  }
}

</mosaic_0001>

<bundles_post_ra>
// kernel: forward.1
= control target key start
LH: loop header
LB: loop body
LE: loop exit
PB: predicated region body
PF: predicated region fallthrough
CT: control target
= control target key end

     0   :  { %s2635_s12 = smov 0   ;;  %s2637_s13 = smov 0   ;;  %s3131_s0 = inlined_call_operand.vmem [shape: bf16[2,1024,128], index: 0, kind: input, shape index: {}]   ;;  %s3132_s1 = inlined_call_operand.vmem [shape: bf16[128,256], index: 1, kind: input, shape index: {}]   ;;  %s3133_s2 = inlined_call_operand.vmem [shape: f32[1,256], index: 2, kind: input, shape index: {}]   ;;  %s3134_s3 = inlined_call_operand.vmem [shape: f32[2,8,256], index: 3, kind: output, shape index: {}]  }
   0x1   :  { %s2639_s14 = smov 0  }
   0x2 LB: > { %s25_s15 = sadd.s32 1, %s2609_s13  ;;  %p2094_p0 = scmp.ge.s32.totalorder %s2613_s14, 1  ;;  %s2613_s14 = sphi %s2639_s14, %s13_s14   ;;  %s2609_s13 = sphi %s2637_s13, %s3136_s13   ;;  %s2605_s12 = sphi %s2635_s12, %s3135_s12  }
   0x3   : > { %p27_p1 = scmp.ge.s32.totalorder %s25_s15, 2  ;;  %p156_p2 = scmp.lt.s32.totalorder %s2613_s14, 3 }
   0x5   : > { %s3138_s15 = smov (%p27_p1, %s25_s15), 0  ;;  %p157_p3 = pnand %p2094_p0, %p156_p2 }
   0x6   : > { %p185_p4 = scmp.lt.s32.totalorder (!%p157_p3), %s2605_s12, 1 }
   0x7   : > { %160 = sbr.rel (%p157_p3) target bundleno = 692 (0x2b4), region = 32 }
   0xc   : > { %v2285_v0 = vld [vmem:[%s3132_s1 + $0x70] sm:$0xf]  ;;  %v2502_v1 = vld [vmem:[%s3132_s1 + $0x74] sm:$0xf0]  ;;  %v2501_v2 = vld [vmem:[%s3132_s1 + $0x74] sm:$0xf] }
   0xd   : > { %v2286_v3 = vor.u32 %v2502_v1, %v2285_v0  ;;  %v2287_v4 = vld [vmem:[%s3132_s1 + $0x78] sm:$0xf0]  ;;  %v2277_v5 = vld [vmem:[%s3132_s1 + $0x60] sm:$0xf]  ;;  %v2500_v6 = vld [vmem:[%s3132_s1 + $0x64] sm:$0xf0] }
   0xe   : > { %v2290_v7 = vor.u32 %v2501_v2, %v2287_v4  ;;  %v2499_v8 = vld [vmem:[%s3132_s1 + $0x64] sm:$0xf]  ;;  %v2279_v9 = vld [vmem:[%s3132_s1 + $0x68] sm:$0xf0]  ;;  %v2278_v10 = vor.u32 %v2500_v6, %v2277_v5  ;;  %v2269_v12 = vld [vmem:[%s3132_s1 + $0x50] sm:$0xf] }
   0xf   : > { %563 = vmatpush.bf16.msra.mxu0 %v2286_v3  ;;  %1414 = vmatpush.bf16.msra.mxu2 %v2286_v3  ;;  %v2282_v11 = vor.u32 %v2499_v8, %v2279_v9  ;;  %v2498_v13 = vld [vmem:[%s3132_s1 + $0x54] sm:$0xf0]  ;;  %v2497_v14 = vld [vmem:[%s3132_s1 + $0x54] sm:$0xf]  ;;  %v2271_v15 = vld [vmem:[%s3132_s1 + $0x58] sm:$0xf0] }
  0x10   : > { %732 = vmatpush.bf16.msra.mxu1 %v2290_v7  ;;  %1583 = vmatpush.bf16.msra.mxu3 %v2290_v7  ;;  %v2270_v16 = vor.u32 %v2498_v13, %v2269_v12  ;;  %v2274_v17 = vor.u32 %v2497_v14, %v2271_v15  ;;  %v2261_v18 = vld [vmem:[%s3132_s1 + $0x40] sm:$0xf]  ;;  %v2496_v19 = vld [vmem:[%s3132_s1 + $0x44] sm:$0xf0]  ;;  %v2495_v20 = vld [vmem:[%s3132_s1 + $0x44] sm:$0xf] }
  0x11   : > { %v2263_v21 = vld [vmem:[%s3132_s1 + $0x48] sm:$0xf0]  ;;  %v2262_v22 = vor.u32 %v2496_v19, %v2261_v18  ;;  %v2253_v24 = vld [vmem:[%s3132_s1 + $0x30] sm:$0xf]  ;;  %v2494_v25 = vld [vmem:[%s3132_s1 + $0x34] sm:$0xf0] }
  0x12   : > { %v2266_v23 = vor.u32 %v2495_v20, %v2263_v21  ;;  %v2493_v26 = vld [vmem:[%s3132_s1 + $0x34] sm:$0xf]  ;;  %v2255_v27 = vld [vmem:[%s3132_s1 + $0x38] sm:$0xf0]  ;;  %v2254_v28 = vor.u32 %v2494_v25, %v2253_v24  ;;  %v2245_v30 = vld [vmem:[%s3132_s1 + $0x20] sm:$0xf] }
  0x13   : > { %564 = vmatpush.bf16.msra.mxu0 %v2278_v10  ;;  %1415 = vmatpush.bf16.msra.mxu2 %v2278_v10  ;;  %v2258_v29 = vor.u32 %v2493_v26, %v2255_v27  ;;  %v2492_v31 = vld [vmem:[%s3132_s1 + $0x24] sm:$0xf0]  ;;  %v2491_v32 = vld [vmem:[%s3132_s1 + $0x24] sm:$0xf]  ;;  %v2247_v33 = vld [vmem:[%s3132_s1 + $0x28] sm:$0xf0] }
  0x14   : > { %733 = vmatpush.bf16.msra.mxu1 %v2282_v11  ;;  %1584 = vmatpush.bf16.msra.mxu3 %v2282_v11  ;;  %v2246_v34 = vor.u32 %v2492_v31, %v2245_v30  ;;  %v2250_v35 = vor.u32 %v2491_v32, %v2247_v33  ;;  %v2237_v36 = vld [vmem:[%s3132_s1 + $0x10] sm:$0xf]  ;;  %v2490_v37 = vld [vmem:[%s3132_s1 + $0x14] sm:$0xf0]  ;;  %s3140_s12 = smov (!%p185_p4, %s2605_s12), 1 }
  0x15   : > { %v2489_v38 = vld [vmem:[%s3132_s1 + $0x14] sm:$0xf]  ;;  %v2239_v39 = vld [vmem:[%s3132_s1 + $0x18] sm:$0xf0]  ;;  %v2238_v40 = vor.u32 %v2490_v37, %v2237_v36  ;;  %v2229_v42 = vld [vmem:[%s3132_s1] sm:$0xf] }
  0x16   : > { %v2242_v41 = vor.u32 %v2489_v38, %v2239_v39  ;;  %v2488_v43 = vld [vmem:[%s3132_s1 + $0x4] sm:$0xf0]  ;;  %s2485_s30 = sshll.u32 %s3140_s12, 9  ;;  %v2487_v44 = vld [vmem:[%s3132_s1 + $0x4] sm:$0xf]  ;;  %s2486_s17 = sshll.u32 %s3140_s12, 4 }
  0x17   : > { %565 = vmatpush.bf16.msra.mxu0 %v2270_v16  ;;  %1416 = vmatpush.bf16.msra.mxu2 %v2270_v16  ;;  %v2231_v45 = vld [vmem:[%s3132_s1 + $0x8] sm:$0xf0]  ;;  %v2230_v46 = vor.u32 %v2488_v43, %v2229_v42  ;;  %s2759_s10 = scalar_lea.vmem %s3131_s0, %s2485_s30  ;;  %v221_v2 = vld [vmem:[%s3133_s2] sm:$0x3]  ;;  %s198_s20 = scalar_lea.vmem %s3134_s3, %s2486_s17 }
  0x18   : > { %734 = vmatpush.bf16.msra.mxu1 %v2274_v17  ;;  %1585 = vmatpush.bf16.msra.mxu3 %v2274_v17  ;;  %v2234_v47 = vor.u32 %v2487_v44, %v2231_v45  ;;  %v2503_v48 = vld [vmem:[%s2759_s10] sm:$0xff]  ;;  %v2504_v50 = vld [vmem:[%s2759_s10 + $0x8] sm:$0xff]  ;;  %v2505_v52 = vld [vmem:[%s2759_s10 + $0x10] sm:$0xff]  ;;  %v2782_v5 = vperm.slane %v221_v2, 0  ;;  %v2784_v6 = vperm.slane %v221_v2, 1 }
  0x19   : > { %v2535_v49 = vld [vmem:[%s2759_s10 + $0x100] sm:$0xff]  ;;  %v2536_v51 = vld [vmem:[%s2759_s10 + $0x108] sm:$0xff]  ;;  %v2537_v53 = vld [vmem:[%s2759_s10 + $0x110] sm:$0xff] }
  0x1a   : > { %v2506_v54 = vld [vmem:[%s2759_s10 + $0x18] sm:$0xff]  ;;  %v2507_v56 = vld [vmem:[%s2759_s10 + $0x20] sm:$0xff]  ;;  %v2508_v58 = vld [vmem:[%s2759_s10 + $0x28] sm:$0xff] }
  0x1b   : > { %566 = vmatpush.bf16.msra.mxu0 %v2262_v22  ;;  %1417 = vmatpush.bf16.msra.mxu2 %v2262_v22  ;;  %v2538_v55 = vld [vmem:[%s2759_s10 + $0x118] sm:$0xff]  ;;  %v2539_v57 = vld [vmem:[%s2759_s10 + $0x120] sm:$0xff]  ;;  %v2540_v59 = vld [vmem:[%s2759_s10 + $0x128] sm:$0xff] }
  0x1c   : > { %735 = vmatpush.bf16.msra.mxu1 %v2266_v23  ;;  %1586 = vmatpush.bf16.msra.mxu3 %v2266_v23  ;;  %v2509_v60 = vld [vmem:[%s2759_s10 + $0x30] sm:$0xff]  ;;  %v2510_v62 = vld [vmem:[%s2759_s10 + $0x38] sm:$0xff]  ;;  %v2511_v0 = vld [vmem:[%s2759_s10 + $0x40] sm:$0xff] }
  0x1d   : > { %v2541_v61 = vld [vmem:[%s2759_s10 + $0x130] sm:$0xff]  ;;  %v2542_v63 = vld [vmem:[%s2759_s10 + $0x138] sm:$0xff]  ;;  %v2543_v1 = vld [vmem:[%s2759_s10 + $0x140] sm:$0xff] }
  0x1e   : > { %v2512_v26 = vld [vmem:[%s2759_s10 + $0x48] sm:$0xff] }
  0x1f   : > { %567 = vmatpush.bf16.msra.mxu0 %v2254_v28  ;;  %1418 = vmatpush.bf16.msra.mxu2 %v2254_v28  ;;  %v2544_v27 = vld [vmem:[%s2759_s10 + $0x148] sm:$0xff] }
  0x20   : > { %736 = vmatpush.bf16.msra.mxu1 %v2258_v29  ;;  %1587 = vmatpush.bf16.msra.mxu3 %v2258_v29 }
  0x23   : > { %568 = vmatpush.bf16.msra.mxu0 %v2246_v34  ;;  %1419 = vmatpush.bf16.msra.mxu2 %v2246_v34 }
  0x24   : > { %737 = vmatpush.bf16.msra.mxu1 %v2250_v35  ;;  %1588 = vmatpush.bf16.msra.mxu3 %v2250_v35 }
  0x27   : > { %569 = vmatpush.bf16.msra.mxu0 %v2238_v40  ;;  %1420 = vmatpush.bf16.msra.mxu2 %v2238_v40 }
  0x28   : > { %738 = vmatpush.bf16.msra.mxu1 %v2242_v41  ;;  %1589 = vmatpush.bf16.msra.mxu3 %v2242_v41 }
  0x2b   : > { %570 = vmatpush.bf16.msra.mxu0 %v2230_v46  ;;  %1421 = vmatpush.bf16.msra.mxu2 %v2230_v46 }
  0x2c   : > { %739 = vmatpush.bf16.msra.mxu1 %v2234_v47  ;;  %1590 = vmatpush.bf16.msra.mxu3 %v2234_v47 }
  0x2e   : > { %571 = vmatmul.bf16.vlgmr.msra.gmra.mxu0 %v2503_v48  ;;  %1422 = vmatmul.bf16.vlgmr.msra.gmra.mxu2 %v2535_v49 }
  0x2f   : > { %740 = vmatmul.bf16.vlgmr.msra.gmra.mxu1 %v2503_v48  ;;  %1591 = vmatmul.bf16.vlgmr.msra.gmra.mxu3 %v2535_v49 }
  0x3e   : > { %576 = vmatmul.bf16.gmra.mxu0 %v2504_v50  ;;  %1427 = vmatmul.bf16.gmra.mxu2 %v2536_v51 }
  0x3f   : > { %745 = vmatmul.bf16.gmra.mxu1 %v2504_v50  ;;  %1596 = vmatmul.bf16.gmra.mxu3 %v2536_v51 }
  0x4e   : > { %581 = vmatmul.bf16.gmra.mxu0 %v2505_v52  ;;  %1432 = vmatmul.bf16.gmra.mxu2 %v2537_v53 }
  0x4f   : > { %750 = vmatmul.bf16.gmra.mxu1 %v2505_v52  ;;  %1601 = vmatmul.bf16.gmra.mxu3 %v2537_v53 }
  0x5e   : > { %586 = vmatmul.bf16.gmra.mxu0 %v2506_v54  ;;  %1437 = vmatmul.bf16.gmra.mxu2 %v2538_v55 }
  0x5f   : > { %755 = vmatmul.bf16.gmra.mxu1 %v2506_v54  ;;  %1606 = vmatmul.bf16.gmra.mxu3 %v2538_v55 }
  0x6e   : > { %591 = vmatmul.bf16.gmra.mxu0 %v2507_v56  ;;  %1442 = vmatmul.bf16.gmra.mxu2 %v2539_v57 }
  0x6f   : > { %760 = vmatmul.bf16.gmra.mxu1 %v2507_v56  ;;  %1611 = vmatmul.bf16.gmra.mxu3 %v2539_v57 }
  0x7e   : > { %596 = vmatmul.bf16.gmra.mxu0 %v2508_v58  ;;  %1447 = vmatmul.bf16.gmra.mxu2 %v2540_v59 }
  0x7f   : > { %765 = vmatmul.bf16.gmra.mxu1 %v2508_v58  ;;  %1616 = vmatmul.bf16.gmra.mxu3 %v2540_v59 }
  0x8e   : > { %601 = vmatmul.bf16.gmra.mxu0 %v2509_v60  ;;  %1452 = vmatmul.bf16.gmra.mxu2 %v2541_v61 }
  0x8f   : > { %770 = vmatmul.bf16.gmra.mxu1 %v2509_v60  ;;  %1621 = vmatmul.bf16.gmra.mxu3 %v2541_v61 }
  0x9e   : > { %606 = vmatmul.bf16.gmra.mxu0 %v2510_v62  ;;  %1457 = vmatmul.bf16.gmra.mxu2 %v2542_v63 }
  0x9f   : > { %775 = vmatmul.bf16.gmra.mxu1 %v2510_v62  ;;  %1626 = vmatmul.bf16.gmra.mxu3 %v2542_v63  ;;  %v2513_v62 = vld [vmem:[%s2759_s10 + $0x50] sm:$0xff] }
  0xa0   : > { %v2545_v63 = vld [vmem:[%s2759_s10 + $0x150] sm:$0xff] }
  0xab   : > { %v572_v3 = vpop.f32.mrf.mxu0 }
  0xac   : > { %v741_v4 = vpop.f32.mrf.mxu1  ;;  %v573_v8 = vadd.f32 %v572_v3, %v2782_v5 }
  0xad   : > { %v742_v10 = vadd.f32 %v741_v4, %v2784_v6 }
  0xae   : > { %611 = vmatmul.bf16.gmra.mxu0 %v2511_v0  ;;  %1462 = vmatmul.bf16.gmra.mxu2 %v2543_v1  ;;  %v901_v15 = vmax.f32 %v573_v8, 0.0 }
  0xaf   : > { %780 = vmatmul.bf16.gmra.mxu1 %v2511_v0  ;;  %1631 = vmatmul.bf16.gmra.mxu3 %v2543_v1  ;;  %v902_v17 = vmax.f32 %v742_v10, 0.0 }
  0xb1   : > { %v1423_v7 = vpop.f32.mrf.mxu2 }
  0xb2   : > { %v1592_v9 = vpop.f32.mrf.mxu3  ;;  %v1424_v19 = vadd.f32 %v1423_v7, %v2782_v5 }
  0xb3   : > { %v574_v11 = vpop.f32.mrf.mxu0  ;;  %v1593_v21 = vadd.f32 %v1592_v9, %v2784_v6 }
  0xb4   : > { %v575_v12 = vadd.f32 %v574_v11, %v2782_v5  ;;  %v743_v13 = vpop.f32.mrf.mxu1  ;;  %v1752_v30 = vmax.f32 %v1424_v19, 0.0 }
  0xb5   : > { %v744_v14 = vadd.f32 %v743_v13, %v2784_v6  ;;  %v1753_v34 = vmax.f32 %v1593_v21, 0.0 }
  0xb6   : > { %v903_v16 = vmax.f32 %v575_v12, 0.0 }
  0xb7   : > { %v904_v18 = vmax.f32 %v744_v14, 0.0 }
  0xb8   : > { %v1029_v20 = vadd.f32 %v903_v16, %v901_v15 }
  0xb9   : > { %v1092_v22 = vadd.f32 %v904_v18, %v902_v17  ;;  %v1425_v23 = vpop.f32.mrf.mxu2 }
  0xba   : > { %v1426_v24 = vadd.f32 %v1425_v23, %v2782_v5  ;;  %v1594_v25 = vpop.f32.mrf.mxu3 }
  0xbb   : > { %v1595_v28 = vadd.f32 %v1594_v25, %v2784_v6  ;;  %v577_v29 = vpop.f32.mrf.mxu0 }
  0xbc   : > { %v1754_v31 = vmax.f32 %v1426_v24, 0.0  ;;  %v578_v32 = vadd.f32 %v577_v29, %v2782_v5  ;;  %v746_v33 = vpop.f32.mrf.mxu1 }
  0xbd   : > { %v1755_v35 = vmax.f32 %v1595_v28, 0.0  ;;  %v747_v36 = vadd.f32 %v746_v33, %v2784_v6 }
  0xbe   : > { %v1880_v37 = vadd.f32 %v1754_v31, %v1752_v30  ;;  %v905_v38 = vmax.f32 %v578_v32, 0.0  ;;  %616 = vmatmul.bf16.gmra.mxu0 %v2512_v26  ;;  %1467 = vmatmul.bf16.gmra.mxu2 %v2544_v27 }
  0xbf   : > { %v1943_v39 = vadd.f32 %v1755_v35, %v1753_v34  ;;  %v906_v40 = vmax.f32 %v747_v36, 0.0  ;;  %785 = vmatmul.bf16.gmra.mxu1 %v2512_v26  ;;  %1636 = vmatmul.bf16.gmra.mxu3 %v2544_v27  ;;  %v2514_v34 = vld [vmem:[%s2759_s10 + $0x58] sm:$0xff] }
  0xc0   : > { %v1030_v41 = vadd.f32 %v1029_v20, %v905_v38  ;;  %v2546_v35 = vld [vmem:[%s2759_s10 + $0x158] sm:$0xff] }
  0xc1   : > { %v1093_v42 = vadd.f32 %v1092_v22, %v906_v40  ;;  %v1428_v43 = vpop.f32.mrf.mxu2 }
  0xc2   : > { %v1429_v44 = vadd.f32 %v1428_v43, %v2782_v5  ;;  %v1597_v45 = vpop.f32.mrf.mxu3 }
  0xc3   : > { %v1598_v46 = vadd.f32 %v1597_v45, %v2784_v6  ;;  %v579_v47 = vpop.f32.mrf.mxu0 }
  0xc4   : > { %v1756_v48 = vmax.f32 %v1429_v44, 0.0  ;;  %v580_v49 = vadd.f32 %v579_v47, %v2782_v5  ;;  %v748_v50 = vpop.f32.mrf.mxu1 }
  0xc5   : > { %v1757_v51 = vmax.f32 %v1598_v46, 0.0  ;;  %v749_v52 = vadd.f32 %v748_v50, %v2784_v6 }
  0xc6   : > { %v1881_v53 = vadd.f32 %v1880_v37, %v1756_v48  ;;  %v907_v54 = vmax.f32 %v580_v49, 0.0 }
  0xc7   : > { %v1944_v55 = vadd.f32 %v1943_v39, %v1757_v51  ;;  %v908_v56 = vmax.f32 %v749_v52, 0.0 }
  0xc8   : > { %v1031_v57 = vadd.f32 %v1030_v41, %v907_v54 }
  0xc9   : > { %v1094_v58 = vadd.f32 %v1093_v42, %v908_v56  ;;  %v1430_v59 = vpop.f32.mrf.mxu2 }
  0xca   : > { %v1431_v60 = vadd.f32 %v1430_v59, %v2782_v5  ;;  %v1599_v61 = vpop.f32.mrf.mxu3 }
  0xcb   : > { %v1600_v0 = vadd.f32 %v1599_v61, %v2784_v6  ;;  %v582_v1 = vpop.f32.mrf.mxu0 }
  0xcc   : > { %v1758_v2 = vmax.f32 %v1431_v60, 0.0  ;;  %v583_v3 = vadd.f32 %v582_v1, %v2782_v5  ;;  %v751_v4 = vpop.f32.mrf.mxu1 }
  0xcd   : > { %v1759_v7 = vmax.f32 %v1600_v0, 0.0  ;;  %v752_v8 = vadd.f32 %v751_v4, %v2784_v6  ;;  %v2515_v4 = vld [vmem:[%s2759_s10 + $0x60] sm:$0xff] }
  0xce   : > { %v1882_v9 = vadd.f32 %v1881_v53, %v1758_v2  ;;  %v909_v10 = vmax.f32 %v583_v3, 0.0  ;;  %621 = vmatmul.bf16.gmra.mxu0 %v2513_v62  ;;  %1472 = vmatmul.bf16.gmra.mxu2 %v2545_v63 }
  0xcf   : > { %v1945_v11 = vadd.f32 %v1944_v55, %v1759_v7  ;;  %v910_v12 = vmax.f32 %v752_v8, 0.0  ;;  %790 = vmatmul.bf16.gmra.mxu1 %v2513_v62  ;;  %1641 = vmatmul.bf16.gmra.mxu3 %v2545_v63  ;;  %v2547_v7 = vld [vmem:[%s2759_s10 + $0x160] sm:$0xff] }
  0xd0   : > { %v1032_v13 = vadd.f32 %v1031_v57, %v909_v10 }
  0xd1   : > { %v1095_v14 = vadd.f32 %v1094_v58, %v910_v12  ;;  %v1433_v15 = vpop.f32.mrf.mxu2 }
  0xd2   : > { %v1434_v16 = vadd.f32 %v1433_v15, %v2782_v5  ;;  %v1602_v17 = vpop.f32.mrf.mxu3 }
  0xd3   : > { %v1603_v18 = vadd.f32 %v1602_v17, %v2784_v6  ;;  %v584_v19 = vpop.f32.mrf.mxu0 }
  0xd4   : > { %v1760_v20 = vmax.f32 %v1434_v16, 0.0  ;;  %v585_v21 = vadd.f32 %v584_v19, %v2782_v5  ;;  %v753_v22 = vpop.f32.mrf.mxu1 }
  0xd5   : > { %v1761_v23 = vmax.f32 %v1603_v18, 0.0  ;;  %v754_v24 = vadd.f32 %v753_v22, %v2784_v6 }
  0xd6   : > { %v1883_v25 = vadd.f32 %v1882_v9, %v1760_v20  ;;  %v911_v26 = vmax.f32 %v585_v21, 0.0 }
  0xd7   : > { %v1946_v27 = vadd.f32 %v1945_v11, %v1761_v23  ;;  %v912_v28 = vmax.f32 %v754_v24, 0.0 }
  0xd8   : > { %v1033_v29 = vadd.f32 %v1032_v13, %v911_v26 }
  0xd9   : > { %v1096_v30 = vadd.f32 %v1095_v14, %v912_v28  ;;  %v1435_v31 = vpop.f32.mrf.mxu2 }
  0xda   : > { %v1436_v32 = vadd.f32 %v1435_v31, %v2782_v5  ;;  %v1604_v33 = vpop.f32.mrf.mxu3 }
  0xdb   : > { %v1605_v36 = vadd.f32 %v1604_v33, %v2784_v6  ;;  %v587_v37 = vpop.f32.mrf.mxu0 }
  0xdc   : > { %v1762_v38 = vmax.f32 %v1436_v32, 0.0  ;;  %v588_v39 = vadd.f32 %v587_v37, %v2782_v5  ;;  %v756_v40 = vpop.f32.mrf.mxu1 }
  0xdd   : > { %v1763_v41 = vmax.f32 %v1605_v36, 0.0  ;;  %v757_v42 = vadd.f32 %v756_v40, %v2784_v6  ;;  %v2516_v40 = vld [vmem:[%s2759_s10 + $0x68] sm:$0xff] }
  0xde   : > { %v1884_v43 = vadd.f32 %v1883_v25, %v1762_v38  ;;  %v913_v44 = vmax.f32 %v588_v39, 0.0  ;;  %626 = vmatmul.bf16.gmra.mxu0 %v2514_v34  ;;  %1477 = vmatmul.bf16.gmra.mxu2 %v2546_v35 }
  0xdf   : > { %v1947_v45 = vadd.f32 %v1946_v27, %v1763_v41  ;;  %v914_v46 = vmax.f32 %v757_v42, 0.0  ;;  %795 = vmatmul.bf16.gmra.mxu1 %v2514_v34  ;;  %1646 = vmatmul.bf16.gmra.mxu3 %v2546_v35  ;;  %v2548_v41 = vld [vmem:[%s2759_s10 + $0x168] sm:$0xff] }
  0xe0   : > { %v1034_v47 = vadd.f32 %v1033_v29, %v913_v44 }
  0xe1   : > { %v1097_v48 = vadd.f32 %v1096_v30, %v914_v46  ;;  %v1438_v49 = vpop.f32.mrf.mxu2 }
  0xe2   : > { %v1439_v50 = vadd.f32 %v1438_v49, %v2782_v5  ;;  %v1607_v51 = vpop.f32.mrf.mxu3 }
  0xe3   : > { %v1608_v52 = vadd.f32 %v1607_v51, %v2784_v6  ;;  %v589_v53 = vpop.f32.mrf.mxu0 }
  0xe4   : > { %v1764_v54 = vmax.f32 %v1439_v50, 0.0  ;;  %v590_v55 = vadd.f32 %v589_v53, %v2782_v5  ;;  %v758_v56 = vpop.f32.mrf.mxu1 }
  0xe5   : > { %v1765_v57 = vmax.f32 %v1608_v52, 0.0  ;;  %v759_v58 = vadd.f32 %v758_v56, %v2784_v6 }
  0xe6   : > { %v1885_v59 = vadd.f32 %v1884_v43, %v1764_v54  ;;  %v915_v60 = vmax.f32 %v590_v55, 0.0 }
  0xe7   : > { %v1948_v61 = vadd.f32 %v1947_v45, %v1765_v57  ;;  %v916_v62 = vmax.f32 %v759_v58, 0.0 }
  0xe8   : > { %v1035_v63 = vadd.f32 %v1034_v47, %v915_v60 }
  0xe9   : > { %v1098_v0 = vadd.f32 %v1097_v48, %v916_v62  ;;  %v1440_v1 = vpop.f32.mrf.mxu2 }
  0xea   : > { %v1441_v2 = vadd.f32 %v1440_v1, %v2782_v5  ;;  %v1609_v3 = vpop.f32.mrf.mxu3 }
  0xeb   : > { %v1610_v8 = vadd.f32 %v1609_v3, %v2784_v6  ;;  %v592_v9 = vpop.f32.mrf.mxu0 }
  0xec   : > { %v1766_v10 = vmax.f32 %v1441_v2, 0.0  ;;  %v593_v11 = vadd.f32 %v592_v9, %v2782_v5  ;;  %v761_v12 = vpop.f32.mrf.mxu1 }
  0xed   : > { %v1767_v13 = vmax.f32 %v1610_v8, 0.0  ;;  %v762_v14 = vadd.f32 %v761_v12, %v2784_v6  ;;  %v2517_v12 = vld [vmem:[%s2759_s10 + $0x70] sm:$0xff] }
  0xee   : > { %v1886_v15 = vadd.f32 %v1885_v59, %v1766_v10  ;;  %v917_v16 = vmax.f32 %v593_v11, 0.0  ;;  %631 = vmatmul.bf16.gmra.mxu0 %v2515_v4  ;;  %1482 = vmatmul.bf16.gmra.mxu2 %v2547_v7 }
  0xef   : > { %v1949_v17 = vadd.f32 %v1948_v61, %v1767_v13  ;;  %v918_v18 = vmax.f32 %v762_v14, 0.0  ;;  %800 = vmatmul.bf16.gmra.mxu1 %v2515_v4  ;;  %1651 = vmatmul.bf16.gmra.mxu3 %v2547_v7  ;;  %v2549_v13 = vld [vmem:[%s2759_s10 + $0x170] sm:$0xff] }
  0xf0   : > { %v1036_v19 = vadd.f32 %v1035_v63, %v917_v16 }
  0xf1   : > { %v1099_v20 = vadd.f32 %v1098_v0, %v918_v18  ;;  %v1443_v21 = vpop.f32.mrf.mxu2 }
  0xf2   : > { %v1444_v22 = vadd.f32 %v1443_v21, %v2782_v5  ;;  %v1612_v23 = vpop.f32.mrf.mxu3 }
  0xf3   : > { %v1613_v24 = vadd.f32 %v1612_v23, %v2784_v6  ;;  %v594_v25 = vpop.f32.mrf.mxu0 }
  0xf4   : > { %v1768_v26 = vmax.f32 %v1444_v22, 0.0  ;;  %v595_v27 = vadd.f32 %v594_v25, %v2782_v5  ;;  %v763_v28 = vpop.f32.mrf.mxu1 }
  0xf5   : > { %v1769_v29 = vmax.f32 %v1613_v24, 0.0  ;;  %v764_v30 = vadd.f32 %v763_v28, %v2784_v6 }
  0xf6   : > { %v1887_v31 = vadd.f32 %v1886_v15, %v1768_v26  ;;  %v919_v32 = vmax.f32 %v595_v27, 0.0 }
  0xf7   : > { %v1950_v33 = vadd.f32 %v1949_v17, %v1769_v29  ;;  %v920_v34 = vmax.f32 %v764_v30, 0.0 }
  0xf8   : > { %v1037_v35 = vadd.f32 %v1036_v19, %v919_v32 }
  0xf9   : > { %v1100_v36 = vadd.f32 %v1099_v20, %v920_v34  ;;  %v1445_v37 = vpop.f32.mrf.mxu2 }
  0xfa   : > { %v1446_v38 = vadd.f32 %v1445_v37, %v2782_v5  ;;  %v1614_v39 = vpop.f32.mrf.mxu3 }
  0xfb   : > { %v1615_v42 = vadd.f32 %v1614_v39, %v2784_v6  ;;  %v597_v43 = vpop.f32.mrf.mxu0 }
  0xfc   : > { %v1770_v44 = vmax.f32 %v1446_v38, 0.0  ;;  %v598_v45 = vadd.f32 %v597_v43, %v2782_v5  ;;  %v766_v46 = vpop.f32.mrf.mxu1 }
  0xfd   : > { %v1771_v47 = vmax.f32 %v1615_v42, 0.0  ;;  %v767_v48 = vadd.f32 %v766_v46, %v2784_v6  ;;  %v2518_v46 = vld [vmem:[%s2759_s10 + $0x78] sm:$0xff] }
  0xfe   : > { %v1888_v49 = vadd.f32 %v1887_v31, %v1770_v44  ;;  %v921_v50 = vmax.f32 %v598_v45, 0.0  ;;  %636 = vmatmul.bf16.gmra.mxu0 %v2516_v40  ;;  %1487 = vmatmul.bf16.gmra.mxu2 %v2548_v41 }
  0xff   : > { %v1951_v51 = vadd.f32 %v1950_v33, %v1771_v47  ;;  %v922_v52 = vmax.f32 %v767_v48, 0.0  ;;  %805 = vmatmul.bf16.gmra.mxu1 %v2516_v40  ;;  %1656 = vmatmul.bf16.gmra.mxu3 %v2548_v41  ;;  %v2550_v47 = vld [vmem:[%s2759_s10 + $0x178] sm:$0xff] }
 0x100   : > { %v1038_v53 = vadd.f32 %v1037_v35, %v921_v50 }
 0x101   : > { %v1101_v54 = vadd.f32 %v1100_v36, %v922_v52  ;;  %v1448_v55 = vpop.f32.mrf.mxu2 }
 0x102   : > { %v1449_v56 = vadd.f32 %v1448_v55, %v2782_v5  ;;  %v1617_v57 = vpop.f32.mrf.mxu3 }
 0x103   : > { %v1618_v58 = vadd.f32 %v1617_v57, %v2784_v6  ;;  %v599_v59 = vpop.f32.mrf.mxu0 }
 0x104   : > { %v1772_v60 = vmax.f32 %v1449_v56, 0.0  ;;  %v600_v61 = vadd.f32 %v599_v59, %v2782_v5  ;;  %v768_v62 = vpop.f32.mrf.mxu1 }
 0x105   : > { %v1773_v63 = vmax.f32 %v1618_v58, 0.0  ;;  %v769_v0 = vadd.f32 %v768_v62, %v2784_v6 }
 0x106   : > { %v1889_v1 = vadd.f32 %v1888_v49, %v1772_v60  ;;  %v923_v2 = vmax.f32 %v600_v61, 0.0 }
 0x107   : > { %v1952_v3 = vadd.f32 %v1951_v51, %v1773_v63  ;;  %v924_v4 = vmax.f32 %v769_v0, 0.0 }
 0x108   : > { %v1039_v7 = vadd.f32 %v1038_v53, %v923_v2 }
 0x109   : > { %v1102_v8 = vadd.f32 %v1101_v54, %v924_v4  ;;  %v1450_v9 = vpop.f32.mrf.mxu2 }
 0x10a   : > { %v1451_v10 = vadd.f32 %v1450_v9, %v2782_v5  ;;  %v1619_v11 = vpop.f32.mrf.mxu3 }
 0x10b   : > { %v1620_v14 = vadd.f32 %v1619_v11, %v2784_v6  ;;  %v602_v15 = vpop.f32.mrf.mxu0 }
 0x10c   : > { %v1774_v16 = vmax.f32 %v1451_v10, 0.0  ;;  %v603_v17 = vadd.f32 %v602_v15, %v2782_v5  ;;  %v771_v18 = vpop.f32.mrf.mxu1 }
 0x10d   : > { %v1775_v19 = vmax.f32 %v1620_v14, 0.0  ;;  %v772_v20 = vadd.f32 %v771_v18, %v2784_v6  ;;  %v2519_v18 = vld [vmem:[%s2759_s10 + $0x80] sm:$0xff] }
 0x10e   : > { %v1890_v21 = vadd.f32 %v1889_v1, %v1774_v16  ;;  %v925_v22 = vmax.f32 %v603_v17, 0.0  ;;  %641 = vmatmul.bf16.gmra.mxu0 %v2517_v12  ;;  %1492 = vmatmul.bf16.gmra.mxu2 %v2549_v13 }
 0x10f   : > { %v1953_v23 = vadd.f32 %v1952_v3, %v1775_v19  ;;  %v926_v24 = vmax.f32 %v772_v20, 0.0  ;;  %810 = vmatmul.bf16.gmra.mxu1 %v2517_v12  ;;  %1661 = vmatmul.bf16.gmra.mxu3 %v2549_v13  ;;  %v2551_v19 = vld [vmem:[%s2759_s10 + $0x180] sm:$0xff] }
 0x110   : > { %v1040_v25 = vadd.f32 %v1039_v7, %v925_v22 }
 0x111   : > { %v1103_v26 = vadd.f32 %v1102_v8, %v926_v24  ;;  %v1453_v27 = vpop.f32.mrf.mxu2 }
 0x112   : > { %v1454_v28 = vadd.f32 %v1453_v27, %v2782_v5  ;;  %v1622_v29 = vpop.f32.mrf.mxu3 }
 0x113   : > { %v1623_v30 = vadd.f32 %v1622_v29, %v2784_v6  ;;  %v604_v31 = vpop.f32.mrf.mxu0 }
 0x114   : > { %v1776_v32 = vmax.f32 %v1454_v28, 0.0  ;;  %v605_v33 = vadd.f32 %v604_v31, %v2782_v5  ;;  %v773_v34 = vpop.f32.mrf.mxu1 }
 0x115   : > { %v1777_v35 = vmax.f32 %v1623_v30, 0.0  ;;  %v774_v36 = vadd.f32 %v773_v34, %v2784_v6 }
 0x116   : > { %v1891_v37 = vadd.f32 %v1890_v21, %v1776_v32  ;;  %v927_v38 = vmax.f32 %v605_v33, 0.0 }
 0x117   : > { %v1954_v39 = vadd.f32 %v1953_v23, %v1777_v35  ;;  %v928_v40 = vmax.f32 %v774_v36, 0.0 }
 0x118   : > { %v1041_v41 = vadd.f32 %v1040_v25, %v927_v38 }
 0x119   : > { %v1104_v42 = vadd.f32 %v1103_v26, %v928_v40  ;;  %v1455_v43 = vpop.f32.mrf.mxu2 }
 0x11a   : > { %v1456_v44 = vadd.f32 %v1455_v43, %v2782_v5  ;;  %v1624_v45 = vpop.f32.mrf.mxu3 }
 0x11b   : > { %v1625_v48 = vadd.f32 %v1624_v45, %v2784_v6  ;;  %v607_v49 = vpop.f32.mrf.mxu0 }
 0x11c   : > { %v1778_v50 = vmax.f32 %v1456_v44, 0.0  ;;  %v608_v51 = vadd.f32 %v607_v49, %v2782_v5  ;;  %v776_v52 = vpop.f32.mrf.mxu1 }
 0x11d   : > { %v1779_v53 = vmax.f32 %v1625_v48, 0.0  ;;  %v777_v54 = vadd.f32 %v776_v52, %v2784_v6  ;;  %v2520_v52 = vld [vmem:[%s2759_s10 + $0x88] sm:$0xff] }
 0x11e   : > { %v1892_v55 = vadd.f32 %v1891_v37, %v1778_v50  ;;  %v929_v56 = vmax.f32 %v608_v51, 0.0  ;;  %646 = vmatmul.bf16.gmra.mxu0 %v2518_v46  ;;  %1497 = vmatmul.bf16.gmra.mxu2 %v2550_v47 }
 0x11f   : > { %v1955_v57 = vadd.f32 %v1954_v39, %v1779_v53  ;;  %v930_v58 = vmax.f32 %v777_v54, 0.0  ;;  %815 = vmatmul.bf16.gmra.mxu1 %v2518_v46  ;;  %1666 = vmatmul.bf16.gmra.mxu3 %v2550_v47  ;;  %v2552_v53 = vld [vmem:[%s2759_s10 + $0x188] sm:$0xff] }
 0x120   : > { %v1042_v59 = vadd.f32 %v1041_v41, %v929_v56 }
 0x121   : > { %v1105_v60 = vadd.f32 %v1104_v42, %v930_v58  ;;  %v1458_v61 = vpop.f32.mrf.mxu2 }
 0x122   : > { %v1459_v62 = vadd.f32 %v1458_v61, %v2782_v5  ;;  %v1627_v63 = vpop.f32.mrf.mxu3 }
 0x123   : > { %v1628_v0 = vadd.f32 %v1627_v63, %v2784_v6  ;;  %v609_v1 = vpop.f32.mrf.mxu0 }
 0x124   : > { %v1780_v2 = vmax.f32 %v1459_v62, 0.0  ;;  %v610_v3 = vadd.f32 %v609_v1, %v2782_v5  ;;  %v778_v4 = vpop.f32.mrf.mxu1 }
 0x125   : > { %v1781_v7 = vmax.f32 %v1628_v0, 0.0  ;;  %v779_v8 = vadd.f32 %v778_v4, %v2784_v6 }
 0x126   : > { %v1893_v9 = vadd.f32 %v1892_v55, %v1780_v2  ;;  %v931_v10 = vmax.f32 %v610_v3, 0.0 }
 0x127   : > { %v1956_v11 = vadd.f32 %v1955_v57, %v1781_v7  ;;  %v932_v12 = vmax.f32 %v779_v8, 0.0 }
 0x128   : > { %v1043_v13 = vadd.f32 %v1042_v59, %v931_v10 }
 0x129   : > { %v1106_v14 = vadd.f32 %v1105_v60, %v932_v12  ;;  %v1460_v15 = vpop.f32.mrf.mxu2 }
 0x12a   : > { %v1461_v16 = vadd.f32 %v1460_v15, %v2782_v5  ;;  %v1629_v17 = vpop.f32.mrf.mxu3 }
 0x12b   : > { %v1630_v20 = vadd.f32 %v1629_v17, %v2784_v6  ;;  %v612_v21 = vpop.f32.mrf.mxu0 }
 0x12c   : > { %v1782_v22 = vmax.f32 %v1461_v16, 0.0  ;;  %v613_v23 = vadd.f32 %v612_v21, %v2782_v5  ;;  %v781_v24 = vpop.f32.mrf.mxu1 }
 0x12d   : > { %v1783_v25 = vmax.f32 %v1630_v20, 0.0  ;;  %v782_v26 = vadd.f32 %v781_v24, %v2784_v6  ;;  %v2521_v24 = vld [vmem:[%s2759_s10 + $0x90] sm:$0xff] }
 0x12e   : > { %v1894_v27 = vadd.f32 %v1893_v9, %v1782_v22  ;;  %v933_v28 = vmax.f32 %v613_v23, 0.0  ;;  %651 = vmatmul.bf16.gmra.mxu0 %v2519_v18  ;;  %1502 = vmatmul.bf16.gmra.mxu2 %v2551_v19 }
 0x12f   : > { %v1957_v29 = vadd.f32 %v1956_v11, %v1783_v25  ;;  %v934_v30 = vmax.f32 %v782_v26, 0.0  ;;  %820 = vmatmul.bf16.gmra.mxu1 %v2519_v18  ;;  %1671 = vmatmul.bf16.gmra.mxu3 %v2551_v19  ;;  %v2553_v25 = vld [vmem:[%s2759_s10 + $0x190] sm:$0xff] }
 0x130   : > { %v1044_v31 = vadd.f32 %v1043_v13, %v933_v28 }
 0x131   : > { %v1107_v32 = vadd.f32 %v1106_v14, %v934_v30  ;;  %v1463_v33 = vpop.f32.mrf.mxu2 }
 0x132   : > { %v1464_v34 = vadd.f32 %v1463_v33, %v2782_v5  ;;  %v1632_v35 = vpop.f32.mrf.mxu3 }
 0x133   : > { %v1633_v36 = vadd.f32 %v1632_v35, %v2784_v6  ;;  %v614_v37 = vpop.f32.mrf.mxu0 }
 0x134   : > { %v1784_v38 = vmax.f32 %v1464_v34, 0.0  ;;  %v615_v39 = vadd.f32 %v614_v37, %v2782_v5  ;;  %v783_v40 = vpop.f32.mrf.mxu1 }
 0x135   : > { %v1785_v41 = vmax.f32 %v1633_v36, 0.0  ;;  %v784_v42 = vadd.f32 %v783_v40, %v2784_v6 }
 0x136   : > { %v1895_v43 = vadd.f32 %v1894_v27, %v1784_v38  ;;  %v935_v44 = vmax.f32 %v615_v39, 0.0 }
 0x137   : > { %v1958_v45 = vadd.f32 %v1957_v29, %v1785_v41  ;;  %v936_v46 = vmax.f32 %v784_v42, 0.0 }
 0x138   : > { %v1045_v47 = vadd.f32 %v1044_v31, %v935_v44 }
 0x139   : > { %v1108_v48 = vadd.f32 %v1107_v32, %v936_v46  ;;  %v1465_v49 = vpop.f32.mrf.mxu2 }
 0x13a   : > { %v1466_v50 = vadd.f32 %v1465_v49, %v2782_v5  ;;  %v1634_v51 = vpop.f32.mrf.mxu3 }
 0x13b   : > { %v1635_v54 = vadd.f32 %v1634_v51, %v2784_v6  ;;  %v617_v55 = vpop.f32.mrf.mxu0 }
 0x13c   : > { %v1786_v56 = vmax.f32 %v1466_v50, 0.0  ;;  %v618_v57 = vadd.f32 %v617_v55, %v2782_v5  ;;  %v786_v58 = vpop.f32.mrf.mxu1 }
 0x13d   : > { %v1787_v59 = vmax.f32 %v1635_v54, 0.0  ;;  %v787_v60 = vadd.f32 %v786_v58, %v2784_v6  ;;  %v2522_v58 = vld [vmem:[%s2759_s10 + $0x98] sm:$0xff] }
 0x13e   : > { %v1896_v61 = vadd.f32 %v1895_v43, %v1786_v56  ;;  %v937_v62 = vmax.f32 %v618_v57, 0.0  ;;  %656 = vmatmul.bf16.gmra.mxu0 %v2520_v52  ;;  %1507 = vmatmul.bf16.gmra.mxu2 %v2552_v53 }
 0x13f   : > { %v1959_v63 = vadd.f32 %v1958_v45, %v1787_v59  ;;  %v938_v0 = vmax.f32 %v787_v60, 0.0  ;;  %825 = vmatmul.bf16.gmra.mxu1 %v2520_v52  ;;  %1676 = vmatmul.bf16.gmra.mxu3 %v2552_v53  ;;  %v2554_v59 = vld [vmem:[%s2759_s10 + $0x198] sm:$0xff] }
 0x140   : > { %v1046_v1 = vadd.f32 %v1045_v47, %v937_v62 }
 0x141   : > { %v1109_v2 = vadd.f32 %v1108_v48, %v938_v0  ;;  %v1468_v3 = vpop.f32.mrf.mxu2 }
 0x142   : > { %v1469_v4 = vadd.f32 %v1468_v3, %v2782_v5  ;;  %v1637_v7 = vpop.f32.mrf.mxu3 }
 0x143   : > { %v1638_v8 = vadd.f32 %v1637_v7, %v2784_v6  ;;  %v619_v9 = vpop.f32.mrf.mxu0 }
 0x144   : > { %v1788_v10 = vmax.f32 %v1469_v4, 0.0  ;;  %v620_v11 = vadd.f32 %v619_v9, %v2782_v5  ;;  %v788_v12 = vpop.f32.mrf.mxu1 }
 0x145   : > { %v1789_v13 = vmax.f32 %v1638_v8, 0.0  ;;  %v789_v14 = vadd.f32 %v788_v12, %v2784_v6 }
 0x146   : > { %v1897_v15 = vadd.f32 %v1896_v61, %v1788_v10  ;;  %v939_v16 = vmax.f32 %v620_v11, 0.0 }
 0x147   : > { %v1960_v17 = vadd.f32 %v1959_v63, %v1789_v13  ;;  %v940_v18 = vmax.f32 %v789_v14, 0.0 }
 0x148   : > { %v1047_v19 = vadd.f32 %v1046_v1, %v939_v16 }
 0x149   : > { %v1110_v20 = vadd.f32 %v1109_v2, %v940_v18  ;;  %v1470_v21 = vpop.f32.mrf.mxu2 }
 0x14a   : > { %v1471_v22 = vadd.f32 %v1470_v21, %v2782_v5  ;;  %v1639_v23 = vpop.f32.mrf.mxu3 }
 0x14b   : > { %v1640_v26 = vadd.f32 %v1639_v23, %v2784_v6  ;;  %v622_v27 = vpop.f32.mrf.mxu0 }
 0x14c   : > { %v1790_v28 = vmax.f32 %v1471_v22, 0.0  ;;  %v623_v29 = vadd.f32 %v622_v27, %v2782_v5  ;;  %v791_v30 = vpop.f32.mrf.mxu1 }
 0x14d   : > { %v1791_v31 = vmax.f32 %v1640_v26, 0.0  ;;  %v792_v32 = vadd.f32 %v791_v30, %v2784_v6  ;;  %v2523_v30 = vld [vmem:[%s2759_s10 + $0xa0] sm:$0xff] }
 0x14e   : > { %v1898_v33 = vadd.f32 %v1897_v15, %v1790_v28  ;;  %v941_v34 = vmax.f32 %v623_v29, 0.0  ;;  %661 = vmatmul.bf16.gmra.mxu0 %v2521_v24  ;;  %1512 = vmatmul.bf16.gmra.mxu2 %v2553_v25 }
 0x14f   : > { %v1961_v35 = vadd.f32 %v1960_v17, %v1791_v31  ;;  %v942_v36 = vmax.f32 %v792_v32, 0.0  ;;  %830 = vmatmul.bf16.gmra.mxu1 %v2521_v24  ;;  %1681 = vmatmul.bf16.gmra.mxu3 %v2553_v25  ;;  %v2555_v31 = vld [vmem:[%s2759_s10 + $0x1a0] sm:$0xff] }
 0x150   : > { %v1048_v37 = vadd.f32 %v1047_v19, %v941_v34 }
 0x151   : > { %v1111_v38 = vadd.f32 %v1110_v20, %v942_v36  ;;  %v1473_v39 = vpop.f32.mrf.mxu2 }
 0x152   : > { %v1474_v40 = vadd.f32 %v1473_v39, %v2782_v5  ;;  %v1642_v41 = vpop.f32.mrf.mxu3 }
 0x153   : > { %v1643_v42 = vadd.f32 %v1642_v41, %v2784_v6  ;;  %v624_v43 = vpop.f32.mrf.mxu0 }
 0x154   : > { %v1792_v44 = vmax.f32 %v1474_v40, 0.0  ;;  %v625_v45 = vadd.f32 %v624_v43, %v2782_v5  ;;  %v793_v46 = vpop.f32.mrf.mxu1 }
 0x155   : > { %v1793_v47 = vmax.f32 %v1643_v42, 0.0  ;;  %v794_v48 = vadd.f32 %v793_v46, %v2784_v6 }
 0x156   : > { %v1899_v49 = vadd.f32 %v1898_v33, %v1792_v44  ;;  %v943_v50 = vmax.f32 %v625_v45, 0.0 }
 0x157   : > { %v1962_v51 = vadd.f32 %v1961_v35, %v1793_v47  ;;  %v944_v52 = vmax.f32 %v794_v48, 0.0 }
 0x158   : > { %v1049_v53 = vadd.f32 %v1048_v37, %v943_v50 }
 0x159   : > { %v1112_v54 = vadd.f32 %v1111_v38, %v944_v52  ;;  %v1475_v55 = vpop.f32.mrf.mxu2 }
 0x15a   : > { %v1476_v56 = vadd.f32 %v1475_v55, %v2782_v5  ;;  %v1644_v57 = vpop.f32.mrf.mxu3 }
 0x15b   : > { %v1645_v60 = vadd.f32 %v1644_v57, %v2784_v6  ;;  %v627_v61 = vpop.f32.mrf.mxu0 }
 0x15c   : > { %v1794_v62 = vmax.f32 %v1476_v56, 0.0  ;;  %v628_v63 = vadd.f32 %v627_v61, %v2782_v5  ;;  %v796_v0 = vpop.f32.mrf.mxu1 }
 0x15d   : > { %v1795_v1 = vmax.f32 %v1645_v60, 0.0  ;;  %v797_v2 = vadd.f32 %v796_v0, %v2784_v6  ;;  %v2524_v0 = vld [vmem:[%s2759_s10 + $0xa8] sm:$0xff] }
 0x15e   : > { %v1900_v3 = vadd.f32 %v1899_v49, %v1794_v62  ;;  %v945_v4 = vmax.f32 %v628_v63, 0.0  ;;  %666 = vmatmul.bf16.gmra.mxu0 %v2522_v58  ;;  %1517 = vmatmul.bf16.gmra.mxu2 %v2554_v59 }
 0x15f   : > { %v1963_v7 = vadd.f32 %v1962_v51, %v1795_v1  ;;  %v946_v8 = vmax.f32 %v797_v2, 0.0  ;;  %835 = vmatmul.bf16.gmra.mxu1 %v2522_v58  ;;  %1686 = vmatmul.bf16.gmra.mxu3 %v2554_v59  ;;  %v2556_v1 = vld [vmem:[%s2759_s10 + $0x1a8] sm:$0xff] }
 0x160   : > { %v1050_v9 = vadd.f32 %v1049_v53, %v945_v4 }
 0x161   : > { %v1113_v10 = vadd.f32 %v1112_v54, %v946_v8  ;;  %v1478_v11 = vpop.f32.mrf.mxu2 }
 0x162   : > { %v1479_v12 = vadd.f32 %v1478_v11, %v2782_v5  ;;  %v1647_v13 = vpop.f32.mrf.mxu3 }
 0x163   : > { %v1648_v14 = vadd.f32 %v1647_v13, %v2784_v6  ;;  %v629_v15 = vpop.f32.mrf.mxu0 }
 0x164   : > { %v1796_v16 = vmax.f32 %v1479_v12, 0.0  ;;  %v630_v17 = vadd.f32 %v629_v15, %v2782_v5  ;;  %v798_v18 = vpop.f32.mrf.mxu1 }
 0x165   : > { %v1797_v19 = vmax.f32 %v1648_v14, 0.0  ;;  %v799_v20 = vadd.f32 %v798_v18, %v2784_v6 }
 0x166   : > { %v1901_v21 = vadd.f32 %v1900_v3, %v1796_v16  ;;  %v947_v22 = vmax.f32 %v630_v17, 0.0 }
 0x167   : > { %v1964_v23 = vadd.f32 %v1963_v7, %v1797_v19  ;;  %v948_v24 = vmax.f32 %v799_v20, 0.0 }
 0x168   : > { %v1051_v25 = vadd.f32 %v1050_v9, %v947_v22 }
 0x169   : > { %v1114_v26 = vadd.f32 %v1113_v10, %v948_v24  ;;  %v1480_v27 = vpop.f32.mrf.mxu2 }
 0x16a   : > { %v1481_v28 = vadd.f32 %v1480_v27, %v2782_v5  ;;  %v1649_v29 = vpop.f32.mrf.mxu3 }
 0x16b   : > { %v1650_v32 = vadd.f32 %v1649_v29, %v2784_v6  ;;  %v632_v33 = vpop.f32.mrf.mxu0 }
 0x16c   : > { %v1798_v34 = vmax.f32 %v1481_v28, 0.0  ;;  %v633_v35 = vadd.f32 %v632_v33, %v2782_v5  ;;  %v801_v36 = vpop.f32.mrf.mxu1 }
 0x16d   : > { %v1799_v37 = vmax.f32 %v1650_v32, 0.0  ;;  %v802_v38 = vadd.f32 %v801_v36, %v2784_v6  ;;  %v2525_v36 = vld [vmem:[%s2759_s10 + $0xb0] sm:$0xff] }
 0x16e   : > { %v1902_v39 = vadd.f32 %v1901_v21, %v1798_v34  ;;  %v949_v40 = vmax.f32 %v633_v35, 0.0  ;;  %671 = vmatmul.bf16.gmra.mxu0 %v2523_v30  ;;  %1522 = vmatmul.bf16.gmra.mxu2 %v2555_v31 }
 0x16f   : > { %v1965_v41 = vadd.f32 %v1964_v23, %v1799_v37  ;;  %v950_v42 = vmax.f32 %v802_v38, 0.0  ;;  %840 = vmatmul.bf16.gmra.mxu1 %v2523_v30  ;;  %1691 = vmatmul.bf16.gmra.mxu3 %v2555_v31  ;;  %v2557_v37 = vld [vmem:[%s2759_s10 + $0x1b0] sm:$0xff] }
 0x170   : > { %v1052_v43 = vadd.f32 %v1051_v25, %v949_v40 }
 0x171   : > { %v1115_v44 = vadd.f32 %v1114_v26, %v950_v42  ;;  %v1483_v45 = vpop.f32.mrf.mxu2 }
 0x172   : > { %v1484_v46 = vadd.f32 %v1483_v45, %v2782_v5  ;;  %v1652_v47 = vpop.f32.mrf.mxu3 }
 0x173   : > { %v1653_v48 = vadd.f32 %v1652_v47, %v2784_v6  ;;  %v634_v49 = vpop.f32.mrf.mxu0 }
 0x174   : > { %v1800_v50 = vmax.f32 %v1484_v46, 0.0  ;;  %v635_v51 = vadd.f32 %v634_v49, %v2782_v5  ;;  %v803_v52 = vpop.f32.mrf.mxu1 }
 0x175   : > { %v1801_v53 = vmax.f32 %v1653_v48, 0.0  ;;  %v804_v54 = vadd.f32 %v803_v52, %v2784_v6 }
 0x176   : > { %v1903_v55 = vadd.f32 %v1902_v39, %v1800_v50  ;;  %v951_v56 = vmax.f32 %v635_v51, 0.0 }
 0x177   : > { %v1966_v57 = vadd.f32 %v1965_v41, %v1801_v53  ;;  %v952_v58 = vmax.f32 %v804_v54, 0.0 }
 0x178   : > { %v1053_v59 = vadd.f32 %v1052_v43, %v951_v56 }
 0x179   : > { %v1116_v60 = vadd.f32 %v1115_v44, %v952_v58  ;;  %v1485_v61 = vpop.f32.mrf.mxu2 }
 0x17a   : > { %v1486_v62 = vadd.f32 %v1485_v61, %v2782_v5  ;;  %v1654_v63 = vpop.f32.mrf.mxu3 }
 0x17b   : > { %v1655_v2 = vadd.f32 %v1654_v63, %v2784_v6  ;;  %v637_v3 = vpop.f32.mrf.mxu0 }
 0x17c   : > { %v1802_v4 = vmax.f32 %v1486_v62, 0.0  ;;  %v638_v7 = vadd.f32 %v637_v3, %v2782_v5  ;;  %v806_v8 = vpop.f32.mrf.mxu1 }
 0x17d   : > { %v1803_v9 = vmax.f32 %v1655_v2, 0.0  ;;  %v807_v10 = vadd.f32 %v806_v8, %v2784_v6  ;;  %v2526_v8 = vld [vmem:[%s2759_s10 + $0xb8] sm:$0xff] }
 0x17e   : > { %v1904_v11 = vadd.f32 %v1903_v55, %v1802_v4  ;;  %v953_v12 = vmax.f32 %v638_v7, 0.0  ;;  %676 = vmatmul.bf16.gmra.mxu0 %v2524_v0  ;;  %1527 = vmatmul.bf16.gmra.mxu2 %v2556_v1 }
 0x17f   : > { %v1967_v13 = vadd.f32 %v1966_v57, %v1803_v9  ;;  %v954_v14 = vmax.f32 %v807_v10, 0.0  ;;  %845 = vmatmul.bf16.gmra.mxu1 %v2524_v0  ;;  %1696 = vmatmul.bf16.gmra.mxu3 %v2556_v1  ;;  %v2558_v9 = vld [vmem:[%s2759_s10 + $0x1b8] sm:$0xff] }
 0x180   : > { %v1054_v15 = vadd.f32 %v1053_v59, %v953_v12 }
 0x181   : > { %v1117_v16 = vadd.f32 %v1116_v60, %v954_v14  ;;  %v1488_v17 = vpop.f32.mrf.mxu2 }
 0x182   : > { %v1489_v18 = vadd.f32 %v1488_v17, %v2782_v5  ;;  %v1657_v19 = vpop.f32.mrf.mxu3 }
 0x183   : > { %v1658_v20 = vadd.f32 %v1657_v19, %v2784_v6  ;;  %v639_v21 = vpop.f32.mrf.mxu0 }
 0x184   : > { %v1804_v22 = vmax.f32 %v1489_v18, 0.0  ;;  %v640_v23 = vadd.f32 %v639_v21, %v2782_v5  ;;  %v808_v24 = vpop.f32.mrf.mxu1 }
 0x185   : > { %v1805_v25 = vmax.f32 %v1658_v20, 0.0  ;;  %v809_v26 = vadd.f32 %v808_v24, %v2784_v6 }
 0x186   : > { %v1905_v27 = vadd.f32 %v1904_v11, %v1804_v22  ;;  %v955_v28 = vmax.f32 %v640_v23, 0.0 }
 0x187   : > { %v1968_v29 = vadd.f32 %v1967_v13, %v1805_v25  ;;  %v956_v30 = vmax.f32 %v809_v26, 0.0 }
 0x188   : > { %v1055_v31 = vadd.f32 %v1054_v15, %v955_v28 }
 0x189   : > { %v1118_v32 = vadd.f32 %v1117_v16, %v956_v30  ;;  %v1490_v33 = vpop.f32.mrf.mxu2 }
 0x18a   : > { %v1491_v34 = vadd.f32 %v1490_v33, %v2782_v5  ;;  %v1659_v35 = vpop.f32.mrf.mxu3 }
 0x18b   : > { %v1660_v38 = vadd.f32 %v1659_v35, %v2784_v6  ;;  %v642_v39 = vpop.f32.mrf.mxu0 }
 0x18c   : > { %v1806_v40 = vmax.f32 %v1491_v34, 0.0  ;;  %v643_v41 = vadd.f32 %v642_v39, %v2782_v5  ;;  %v811_v42 = vpop.f32.mrf.mxu1 }
 0x18d   : > { %v1807_v43 = vmax.f32 %v1660_v38, 0.0  ;;  %v812_v44 = vadd.f32 %v811_v42, %v2784_v6  ;;  %v2527_v42 = vld [vmem:[%s2759_s10 + $0xc0] sm:$0xff] }
 0x18e   : > { %v1906_v45 = vadd.f32 %v1905_v27, %v1806_v40  ;;  %v957_v46 = vmax.f32 %v643_v41, 0.0  ;;  %681 = vmatmul.bf16.gmra.mxu0 %v2525_v36  ;;  %1532 = vmatmul.bf16.gmra.mxu2 %v2557_v37 }
 0x18f   : > { %v1969_v47 = vadd.f32 %v1968_v29, %v1807_v43  ;;  %v958_v48 = vmax.f32 %v812_v44, 0.0  ;;  %850 = vmatmul.bf16.gmra.mxu1 %v2525_v36  ;;  %1701 = vmatmul.bf16.gmra.mxu3 %v2557_v37  ;;  %v2559_v43 = vld [vmem:[%s2759_s10 + $0x1c0] sm:$0xff] }
 0x190   : > { %v1056_v49 = vadd.f32 %v1055_v31, %v957_v46 }
 0x191   : > { %v1119_v50 = vadd.f32 %v1118_v32, %v958_v48  ;;  %v1493_v51 = vpop.f32.mrf.mxu2 }
 0x192   : > { %v1494_v52 = vadd.f32 %v1493_v51, %v2782_v5  ;;  %v1662_v53 = vpop.f32.mrf.mxu3 }
 0x193   : > { %v1663_v54 = vadd.f32 %v1662_v53, %v2784_v6  ;;  %v644_v55 = vpop.f32.mrf.mxu0 }
 0x194   : > { %v1808_v56 = vmax.f32 %v1494_v52, 0.0  ;;  %v645_v57 = vadd.f32 %v644_v55, %v2782_v5  ;;  %v813_v58 = vpop.f32.mrf.mxu1 }
 0x195   : > { %v1809_v59 = vmax.f32 %v1663_v54, 0.0  ;;  %v814_v60 = vadd.f32 %v813_v58, %v2784_v6 }
 0x196   : > { %v1907_v61 = vadd.f32 %v1906_v45, %v1808_v56  ;;  %v959_v62 = vmax.f32 %v645_v57, 0.0 }
 0x197   : > { %v1970_v63 = vadd.f32 %v1969_v47, %v1809_v59  ;;  %v960_v0 = vmax.f32 %v814_v60, 0.0 }
 0x198   : > { %v1057_v1 = vadd.f32 %v1056_v49, %v959_v62 }
 0x199   : > { %v1120_v2 = vadd.f32 %v1119_v50, %v960_v0  ;;  %v1495_v3 = vpop.f32.mrf.mxu2 }
 0x19a   : > { %v1496_v4 = vadd.f32 %v1495_v3, %v2782_v5  ;;  %v1664_v7 = vpop.f32.mrf.mxu3 }
 0x19b   : > { %v1665_v10 = vadd.f32 %v1664_v7, %v2784_v6  ;;  %v647_v11 = vpop.f32.mrf.mxu0 }
 0x19c   : > { %v1810_v12 = vmax.f32 %v1496_v4, 0.0  ;;  %v648_v13 = vadd.f32 %v647_v11, %v2782_v5  ;;  %v816_v14 = vpop.f32.mrf.mxu1 }
 0x19d   : > { %v1811_v15 = vmax.f32 %v1665_v10, 0.0  ;;  %v817_v16 = vadd.f32 %v816_v14, %v2784_v6  ;;  %v2528_v14 = vld [vmem:[%s2759_s10 + $0xc8] sm:$0xff] }
 0x19e   : > { %v1908_v17 = vadd.f32 %v1907_v61, %v1810_v12  ;;  %v961_v18 = vmax.f32 %v648_v13, 0.0  ;;  %686 = vmatmul.bf16.gmra.mxu0 %v2526_v8  ;;  %1537 = vmatmul.bf16.gmra.mxu2 %v2558_v9 }
 0x19f   : > { %v1971_v19 = vadd.f32 %v1970_v63, %v1811_v15  ;;  %v962_v20 = vmax.f32 %v817_v16, 0.0  ;;  %855 = vmatmul.bf16.gmra.mxu1 %v2526_v8  ;;  %1706 = vmatmul.bf16.gmra.mxu3 %v2558_v9  ;;  %v2560_v15 = vld [vmem:[%s2759_s10 + $0x1c8] sm:$0xff] }
 0x1a0   : > { %v1058_v21 = vadd.f32 %v1057_v1, %v961_v18 }
 0x1a1   : > { %v1121_v22 = vadd.f32 %v1120_v2, %v962_v20  ;;  %v1498_v23 = vpop.f32.mrf.mxu2 }
 0x1a2   : > { %v1499_v24 = vadd.f32 %v1498_v23, %v2782_v5  ;;  %v1667_v25 = vpop.f32.mrf.mxu3 }
 0x1a3   : > { %v1668_v26 = vadd.f32 %v1667_v25, %v2784_v6  ;;  %v649_v27 = vpop.f32.mrf.mxu0 }
 0x1a4   : > { %v1812_v28 = vmax.f32 %v1499_v24, 0.0  ;;  %v650_v29 = vadd.f32 %v649_v27, %v2782_v5  ;;  %v818_v30 = vpop.f32.mrf.mxu1 }
 0x1a5   : > { %v1813_v31 = vmax.f32 %v1668_v26, 0.0  ;;  %v819_v32 = vadd.f32 %v818_v30, %v2784_v6 }
 0x1a6   : > { %v1909_v33 = vadd.f32 %v1908_v17, %v1812_v28  ;;  %v963_v34 = vmax.f32 %v650_v29, 0.0 }
 0x1a7   : > { %v1972_v35 = vadd.f32 %v1971_v19, %v1813_v31  ;;  %v964_v36 = vmax.f32 %v819_v32, 0.0 }
 0x1a8   : > { %v1059_v37 = vadd.f32 %v1058_v21, %v963_v34 }
 0x1a9   : > { %v1122_v38 = vadd.f32 %v1121_v22, %v964_v36  ;;  %v1500_v39 = vpop.f32.mrf.mxu2 }
 0x1aa   : > { %v1501_v40 = vadd.f32 %v1500_v39, %v2782_v5  ;;  %v1669_v41 = vpop.f32.mrf.mxu3 }
 0x1ab   : > { %v1670_v44 = vadd.f32 %v1669_v41, %v2784_v6  ;;  %v652_v45 = vpop.f32.mrf.mxu0 }
 0x1ac   : > { %v1814_v46 = vmax.f32 %v1501_v40, 0.0  ;;  %v653_v47 = vadd.f32 %v652_v45, %v2782_v5  ;;  %v821_v48 = vpop.f32.mrf.mxu1 }
 0x1ad   : > { %v1815_v49 = vmax.f32 %v1670_v44, 0.0  ;;  %v822_v50 = vadd.f32 %v821_v48, %v2784_v6  ;;  %v2529_v48 = vld [vmem:[%s2759_s10 + $0xd0] sm:$0xff] }
 0x1ae   : > { %v1910_v51 = vadd.f32 %v1909_v33, %v1814_v46  ;;  %v965_v52 = vmax.f32 %v653_v47, 0.0  ;;  %691 = vmatmul.bf16.gmra.mxu0 %v2527_v42  ;;  %1542 = vmatmul.bf16.gmra.mxu2 %v2559_v43 }
 0x1af   : > { %v1973_v53 = vadd.f32 %v1972_v35, %v1815_v49  ;;  %v966_v54 = vmax.f32 %v822_v50, 0.0  ;;  %860 = vmatmul.bf16.gmra.mxu1 %v2527_v42  ;;  %1711 = vmatmul.bf16.gmra.mxu3 %v2559_v43  ;;  %v2561_v49 = vld [vmem:[%s2759_s10 + $0x1d0] sm:$0xff] }
 0x1b0   : > { %v1060_v55 = vadd.f32 %v1059_v37, %v965_v52 }
 0x1b1   : > { %v1123_v56 = vadd.f32 %v1122_v38, %v966_v54  ;;  %v1503_v57 = vpop.f32.mrf.mxu2 }
 0x1b2   : > { %v1504_v58 = vadd.f32 %v1503_v57, %v2782_v5  ;;  %v1672_v59 = vpop.f32.mrf.mxu3 }
 0x1b3   : > { %v1673_v60 = vadd.f32 %v1672_v59, %v2784_v6  ;;  %v654_v61 = vpop.f32.mrf.mxu0 }
 0x1b4   : > { %v1816_v62 = vmax.f32 %v1504_v58, 0.0  ;;  %v655_v63 = vadd.f32 %v654_v61, %v2782_v5  ;;  %v823_v0 = vpop.f32.mrf.mxu1 }
 0x1b5   : > { %v1817_v1 = vmax.f32 %v1673_v60, 0.0  ;;  %v824_v2 = vadd.f32 %v823_v0, %v2784_v6 }
 0x1b6   : > { %v1911_v3 = vadd.f32 %v1910_v51, %v1816_v62  ;;  %v967_v4 = vmax.f32 %v655_v63, 0.0 }
 0x1b7   : > { %v1974_v7 = vadd.f32 %v1973_v53, %v1817_v1  ;;  %v968_v8 = vmax.f32 %v824_v2, 0.0 }
 0x1b8   : > { %v1061_v9 = vadd.f32 %v1060_v55, %v967_v4 }
 0x1b9   : > { %v1124_v10 = vadd.f32 %v1123_v56, %v968_v8  ;;  %v1505_v11 = vpop.f32.mrf.mxu2 }
 0x1ba   : > { %v1506_v12 = vadd.f32 %v1505_v11, %v2782_v5  ;;  %v1674_v13 = vpop.f32.mrf.mxu3 }
 0x1bb   : > { %v1675_v16 = vadd.f32 %v1674_v13, %v2784_v6  ;;  %v657_v17 = vpop.f32.mrf.mxu0 }
 0x1bc   : > { %v1818_v18 = vmax.f32 %v1506_v12, 0.0  ;;  %v658_v19 = vadd.f32 %v657_v17, %v2782_v5  ;;  %v826_v20 = vpop.f32.mrf.mxu1 }
 0x1bd   : > { %v1819_v21 = vmax.f32 %v1675_v16, 0.0  ;;  %v827_v22 = vadd.f32 %v826_v20, %v2784_v6  ;;  %v2530_v20 = vld [vmem:[%s2759_s10 + $0xd8] sm:$0xff] }
 0x1be   : > { %v1912_v23 = vadd.f32 %v1911_v3, %v1818_v18  ;;  %v969_v24 = vmax.f32 %v658_v19, 0.0  ;;  %696 = vmatmul.bf16.gmra.mxu0 %v2528_v14  ;;  %1547 = vmatmul.bf16.gmra.mxu2 %v2560_v15 }
 0x1bf   : > { %v1975_v25 = vadd.f32 %v1974_v7, %v1819_v21  ;;  %v970_v26 = vmax.f32 %v827_v22, 0.0  ;;  %865 = vmatmul.bf16.gmra.mxu1 %v2528_v14  ;;  %1716 = vmatmul.bf16.gmra.mxu3 %v2560_v15  ;;  %v2562_v21 = vld [vmem:[%s2759_s10 + $0x1d8] sm:$0xff] }
 0x1c0   : > { %v1062_v27 = vadd.f32 %v1061_v9, %v969_v24 }
 0x1c1   : > { %v1125_v28 = vadd.f32 %v1124_v10, %v970_v26  ;;  %v1508_v29 = vpop.f32.mrf.mxu2 }
 0x1c2   : > { %v1509_v30 = vadd.f32 %v1508_v29, %v2782_v5  ;;  %v1677_v31 = vpop.f32.mrf.mxu3 }
 0x1c3   : > { %v1678_v32 = vadd.f32 %v1677_v31, %v2784_v6  ;;  %v659_v33 = vpop.f32.mrf.mxu0 }
 0x1c4   : > { %v1820_v34 = vmax.f32 %v1509_v30, 0.0  ;;  %v660_v35 = vadd.f32 %v659_v33, %v2782_v5  ;;  %v828_v36 = vpop.f32.mrf.mxu1 }
 0x1c5   : > { %v1821_v37 = vmax.f32 %v1678_v32, 0.0  ;;  %v829_v38 = vadd.f32 %v828_v36, %v2784_v6 }
 0x1c6   : > { %v1913_v39 = vadd.f32 %v1912_v23, %v1820_v34  ;;  %v971_v40 = vmax.f32 %v660_v35, 0.0 }
 0x1c7   : > { %v1976_v41 = vadd.f32 %v1975_v25, %v1821_v37  ;;  %v972_v42 = vmax.f32 %v829_v38, 0.0 }
 0x1c8   : > { %v1063_v43 = vadd.f32 %v1062_v27, %v971_v40 }
 0x1c9   : > { %v1126_v44 = vadd.f32 %v1125_v28, %v972_v42  ;;  %v1510_v45 = vpop.f32.mrf.mxu2 }
 0x1ca   : > { %v1511_v46 = vadd.f32 %v1510_v45, %v2782_v5  ;;  %v1679_v47 = vpop.f32.mrf.mxu3 }
 0x1cb   : > { %v1680_v50 = vadd.f32 %v1679_v47, %v2784_v6  ;;  %v662_v51 = vpop.f32.mrf.mxu0 }
 0x1cc   : > { %v1822_v52 = vmax.f32 %v1511_v46, 0.0  ;;  %v663_v53 = vadd.f32 %v662_v51, %v2782_v5  ;;  %v831_v54 = vpop.f32.mrf.mxu1 }
 0x1cd   : > { %v1823_v55 = vmax.f32 %v1680_v50, 0.0  ;;  %v832_v56 = vadd.f32 %v831_v54, %v2784_v6  ;;  %v2531_v54 = vld [vmem:[%s2759_s10 + $0xe0] sm:$0xff] }
 0x1ce   : > { %v1914_v57 = vadd.f32 %v1913_v39, %v1822_v52  ;;  %v973_v58 = vmax.f32 %v663_v53, 0.0  ;;  %701 = vmatmul.bf16.gmra.mxu0 %v2529_v48  ;;  %1552 = vmatmul.bf16.gmra.mxu2 %v2561_v49 }
 0x1cf   : > { %v1977_v59 = vadd.f32 %v1976_v41, %v1823_v55  ;;  %v974_v60 = vmax.f32 %v832_v56, 0.0  ;;  %870 = vmatmul.bf16.gmra.mxu1 %v2529_v48  ;;  %1721 = vmatmul.bf16.gmra.mxu3 %v2561_v49  ;;  %v2563_v55 = vld [vmem:[%s2759_s10 + $0x1e0] sm:$0xff] }
 0x1d0   : > { %v1064_v61 = vadd.f32 %v1063_v43, %v973_v58 }
 0x1d1   : > { %v1127_v62 = vadd.f32 %v1126_v44, %v974_v60  ;;  %v1513_v63 = vpop.f32.mrf.mxu2 }
 0x1d2   : > { %v1514_v0 = vadd.f32 %v1513_v63, %v2782_v5  ;;  %v1682_v1 = vpop.f32.mrf.mxu3 }
 0x1d3   : > { %v1683_v2 = vadd.f32 %v1682_v1, %v2784_v6  ;;  %v664_v3 = vpop.f32.mrf.mxu0 }
 0x1d4   : > { %v1824_v4 = vmax.f32 %v1514_v0, 0.0  ;;  %v665_v7 = vadd.f32 %v664_v3, %v2782_v5  ;;  %v833_v8 = vpop.f32.mrf.mxu1 }
 0x1d5   : > { %v1825_v9 = vmax.f32 %v1683_v2, 0.0  ;;  %v834_v10 = vadd.f32 %v833_v8, %v2784_v6 }
 0x1d6   : > { %v1915_v11 = vadd.f32 %v1914_v57, %v1824_v4  ;;  %v975_v12 = vmax.f32 %v665_v7, 0.0 }
 0x1d7   : > { %v1978_v13 = vadd.f32 %v1977_v59, %v1825_v9  ;;  %v976_v14 = vmax.f32 %v834_v10, 0.0 }
 0x1d8   : > { %v1065_v15 = vadd.f32 %v1064_v61, %v975_v12 }
 0x1d9   : > { %v1128_v16 = vadd.f32 %v1127_v62, %v976_v14  ;;  %v1515_v17 = vpop.f32.mrf.mxu2 }
 0x1da   : > { %v1516_v18 = vadd.f32 %v1515_v17, %v2782_v5  ;;  %v1684_v19 = vpop.f32.mrf.mxu3 }
 0x1db   : > { %v1685_v22 = vadd.f32 %v1684_v19, %v2784_v6  ;;  %v667_v23 = vpop.f32.mrf.mxu0 }
 0x1dc   : > { %v1826_v24 = vmax.f32 %v1516_v18, 0.0  ;;  %v668_v25 = vadd.f32 %v667_v23, %v2782_v5  ;;  %v836_v26 = vpop.f32.mrf.mxu1 }
 0x1dd   : > { %v1827_v27 = vmax.f32 %v1685_v22, 0.0  ;;  %v837_v28 = vadd.f32 %v836_v26, %v2784_v6  ;;  %v2532_v26 = vld [vmem:[%s2759_s10 + $0xe8] sm:$0xff] }
 0x1de   : > { %v1916_v29 = vadd.f32 %v1915_v11, %v1826_v24  ;;  %v977_v30 = vmax.f32 %v668_v25, 0.0  ;;  %706 = vmatmul.bf16.gmra.mxu0 %v2530_v20  ;;  %1557 = vmatmul.bf16.gmra.mxu2 %v2562_v21 }
 0x1df   : > { %v1979_v31 = vadd.f32 %v1978_v13, %v1827_v27  ;;  %v978_v32 = vmax.f32 %v837_v28, 0.0  ;;  %875 = vmatmul.bf16.gmra.mxu1 %v2530_v20  ;;  %1726 = vmatmul.bf16.gmra.mxu3 %v2562_v21  ;;  %v2564_v27 = vld [vmem:[%s2759_s10 + $0x1e8] sm:$0xff] }
 0x1e0   : > { %v1066_v33 = vadd.f32 %v1065_v15, %v977_v30 }
 0x1e1   : > { %v1129_v34 = vadd.f32 %v1128_v16, %v978_v32  ;;  %v1518_v35 = vpop.f32.mrf.mxu2 }
 0x1e2   : > { %v1519_v36 = vadd.f32 %v1518_v35, %v2782_v5  ;;  %v1687_v37 = vpop.f32.mrf.mxu3 }
 0x1e3   : > { %v1688_v38 = vadd.f32 %v1687_v37, %v2784_v6  ;;  %v669_v39 = vpop.f32.mrf.mxu0 }
 0x1e4   : > { %v1828_v40 = vmax.f32 %v1519_v36, 0.0  ;;  %v670_v41 = vadd.f32 %v669_v39, %v2782_v5  ;;  %v838_v42 = vpop.f32.mrf.mxu1 }
 0x1e5   : > { %v1829_v43 = vmax.f32 %v1688_v38, 0.0  ;;  %v839_v44 = vadd.f32 %v838_v42, %v2784_v6 }
 0x1e6   : > { %v1917_v45 = vadd.f32 %v1916_v29, %v1828_v40  ;;  %v979_v46 = vmax.f32 %v670_v41, 0.0 }
 0x1e7   : > { %v1980_v47 = vadd.f32 %v1979_v31, %v1829_v43  ;;  %v980_v48 = vmax.f32 %v839_v44, 0.0 }
 0x1e8   : > { %v1067_v49 = vadd.f32 %v1066_v33, %v979_v46 }
 0x1e9   : > { %v1130_v50 = vadd.f32 %v1129_v34, %v980_v48  ;;  %v1520_v51 = vpop.f32.mrf.mxu2 }
 0x1ea   : > { %v1521_v52 = vadd.f32 %v1520_v51, %v2782_v5  ;;  %v1689_v53 = vpop.f32.mrf.mxu3 }
 0x1eb   : > { %v1690_v56 = vadd.f32 %v1689_v53, %v2784_v6  ;;  %v672_v57 = vpop.f32.mrf.mxu0 }
 0x1ec   : > { %v1830_v58 = vmax.f32 %v1521_v52, 0.0  ;;  %v673_v59 = vadd.f32 %v672_v57, %v2782_v5  ;;  %v841_v60 = vpop.f32.mrf.mxu1 }
 0x1ed   : > { %v1831_v61 = vmax.f32 %v1690_v56, 0.0  ;;  %v842_v62 = vadd.f32 %v841_v60, %v2784_v6  ;;  %v2533_v60 = vld [vmem:[%s2759_s10 + $0xf0] sm:$0xff] }
 0x1ee   : > { %v1918_v63 = vadd.f32 %v1917_v45, %v1830_v58  ;;  %v981_v0 = vmax.f32 %v673_v59, 0.0  ;;  %711 = vmatmul.bf16.gmra.mxu0 %v2531_v54  ;;  %1562 = vmatmul.bf16.gmra.mxu2 %v2563_v55 }
 0x1ef   : > { %v1981_v1 = vadd.f32 %v1980_v47, %v1831_v61  ;;  %v982_v2 = vmax.f32 %v842_v62, 0.0  ;;  %880 = vmatmul.bf16.gmra.mxu1 %v2531_v54  ;;  %1731 = vmatmul.bf16.gmra.mxu3 %v2563_v55  ;;  %v2565_v61 = vld [vmem:[%s2759_s10 + $0x1f0] sm:$0xff] }
 0x1f0   : > { %v1068_v3 = vadd.f32 %v1067_v49, %v981_v0 }
 0x1f1   : > { %v1131_v4 = vadd.f32 %v1130_v50, %v982_v2  ;;  %v1523_v7 = vpop.f32.mrf.mxu2 }
 0x1f2   : > { %v1524_v8 = vadd.f32 %v1523_v7, %v2782_v5  ;;  %v1692_v9 = vpop.f32.mrf.mxu3 }
 0x1f3   : > { %v1693_v10 = vadd.f32 %v1692_v9, %v2784_v6  ;;  %v674_v11 = vpop.f32.mrf.mxu0 }
 0x1f4   : > { %v1832_v12 = vmax.f32 %v1524_v8, 0.0  ;;  %v675_v13 = vadd.f32 %v674_v11, %v2782_v5  ;;  %v843_v14 = vpop.f32.mrf.mxu1 }
 0x1f5   : > { %v1833_v15 = vmax.f32 %v1693_v10, 0.0  ;;  %v844_v16 = vadd.f32 %v843_v14, %v2784_v6 }
 0x1f6   : > { %v1919_v17 = vadd.f32 %v1918_v63, %v1832_v12  ;;  %v983_v18 = vmax.f32 %v675_v13, 0.0 }
 0x1f7   : > { %v1982_v19 = vadd.f32 %v1981_v1, %v1833_v15  ;;  %v984_v20 = vmax.f32 %v844_v16, 0.0 }
 0x1f8   : > { %v1069_v21 = vadd.f32 %v1068_v3, %v983_v18 }
 0x1f9   : > { %v1132_v22 = vadd.f32 %v1131_v4, %v984_v20  ;;  %v1525_v23 = vpop.f32.mrf.mxu2 }
 0x1fa   : > { %v1526_v24 = vadd.f32 %v1525_v23, %v2782_v5  ;;  %v1694_v25 = vpop.f32.mrf.mxu3 }
 0x1fb   : > { %v1695_v28 = vadd.f32 %v1694_v25, %v2784_v6  ;;  %v677_v29 = vpop.f32.mrf.mxu0 }
 0x1fc   : > { %v1834_v30 = vmax.f32 %v1526_v24, 0.0  ;;  %v678_v31 = vadd.f32 %v677_v29, %v2782_v5  ;;  %v846_v32 = vpop.f32.mrf.mxu1 }
 0x1fd   : > { %v1835_v33 = vmax.f32 %v1695_v28, 0.0  ;;  %v847_v34 = vadd.f32 %v846_v32, %v2784_v6  ;;  %v2534_v32 = vld [vmem:[%s2759_s10 + $0xf8] sm:$0xff] }
 0x1fe   : > { %v1920_v35 = vadd.f32 %v1919_v17, %v1834_v30  ;;  %v985_v36 = vmax.f32 %v678_v31, 0.0  ;;  %716 = vmatmul.bf16.gmra.mxu0 %v2532_v26  ;;  %1567 = vmatmul.bf16.gmra.mxu2 %v2564_v27 }
 0x1ff   : > { %v1983_v37 = vadd.f32 %v1982_v19, %v1835_v33  ;;  %v986_v38 = vmax.f32 %v847_v34, 0.0  ;;  %885 = vmatmul.bf16.gmra.mxu1 %v2532_v26  ;;  %1736 = vmatmul.bf16.gmra.mxu3 %v2564_v27  ;;  %v2566_v33 = vld [vmem:[%s2759_s10 + $0x1f8] sm:$0xff] }
 0x200   : > { %v1070_v39 = vadd.f32 %v1069_v21, %v985_v36 }
 0x201   : > { %v1133_v40 = vadd.f32 %v1132_v22, %v986_v38  ;;  %v1528_v41 = vpop.f32.mrf.mxu2 }
 0x202   : > { %v1529_v42 = vadd.f32 %v1528_v41, %v2782_v5  ;;  %v1697_v43 = vpop.f32.mrf.mxu3 }
 0x203   : > { %v1698_v44 = vadd.f32 %v1697_v43, %v2784_v6  ;;  %v679_v45 = vpop.f32.mrf.mxu0 }
 0x204   : > { %v1836_v46 = vmax.f32 %v1529_v42, 0.0  ;;  %v680_v47 = vadd.f32 %v679_v45, %v2782_v5  ;;  %v848_v48 = vpop.f32.mrf.mxu1 }
 0x205   : > { %v1837_v49 = vmax.f32 %v1698_v44, 0.0  ;;  %v849_v50 = vadd.f32 %v848_v48, %v2784_v6 }
 0x206   : > { %v1921_v51 = vadd.f32 %v1920_v35, %v1836_v46  ;;  %v987_v52 = vmax.f32 %v680_v47, 0.0 }
 0x207   : > { %v1984_v53 = vadd.f32 %v1983_v37, %v1837_v49  ;;  %v988_v54 = vmax.f32 %v849_v50, 0.0 }
 0x208   : > { %v1071_v55 = vadd.f32 %v1070_v39, %v987_v52 }
 0x209   : > { %v1134_v56 = vadd.f32 %v1133_v40, %v988_v54  ;;  %v1530_v57 = vpop.f32.mrf.mxu2 }
 0x20a   : > { %v1531_v58 = vadd.f32 %v1530_v57, %v2782_v5  ;;  %v1699_v59 = vpop.f32.mrf.mxu3 }
 0x20b   : > { %v1700_v62 = vadd.f32 %v1699_v59, %v2784_v6  ;;  %v682_v63 = vpop.f32.mrf.mxu0 }
 0x20c   : > { %v1838_v0 = vmax.f32 %v1531_v58, 0.0  ;;  %v683_v1 = vadd.f32 %v682_v63, %v2782_v5  ;;  %v851_v2 = vpop.f32.mrf.mxu1 }
 0x20d   : > { %v1839_v3 = vmax.f32 %v1700_v62, 0.0  ;;  %v852_v4 = vadd.f32 %v851_v2, %v2784_v6 }
 0x20e   : > { %v1922_v7 = vadd.f32 %v1921_v51, %v1838_v0  ;;  %v989_v8 = vmax.f32 %v683_v1, 0.0  ;;  %721 = vmatmul.bf16.gmra.mxu0 %v2533_v60  ;;  %1572 = vmatmul.bf16.gmra.mxu2 %v2565_v61 }
 0x20f   : > { %v1985_v9 = vadd.f32 %v1984_v53, %v1839_v3  ;;  %v990_v10 = vmax.f32 %v852_v4, 0.0  ;;  %890 = vmatmul.bf16.gmra.mxu1 %v2533_v60  ;;  %1741 = vmatmul.bf16.gmra.mxu3 %v2565_v61 }
 0x210   : > { %v1072_v11 = vadd.f32 %v1071_v55, %v989_v8 }
 0x211   : > { %v1135_v12 = vadd.f32 %v1134_v56, %v990_v10  ;;  %v1533_v13 = vpop.f32.mrf.mxu2 }
 0x212   : > { %v1534_v14 = vadd.f32 %v1533_v13, %v2782_v5  ;;  %v1702_v15 = vpop.f32.mrf.mxu3 }
 0x213   : > { %v1703_v16 = vadd.f32 %v1702_v15, %v2784_v6  ;;  %v684_v17 = vpop.f32.mrf.mxu0 }
 0x214   : > { %v1840_v18 = vmax.f32 %v1534_v14, 0.0  ;;  %v685_v19 = vadd.f32 %v684_v17, %v2782_v5  ;;  %v853_v20 = vpop.f32.mrf.mxu1 }
 0x215   : > { %v1841_v21 = vmax.f32 %v1703_v16, 0.0  ;;  %v854_v22 = vadd.f32 %v853_v20, %v2784_v6 }
 0x216   : > { %v1923_v23 = vadd.f32 %v1922_v7, %v1840_v18  ;;  %v991_v24 = vmax.f32 %v685_v19, 0.0 }
 0x217   : > { %v1986_v25 = vadd.f32 %v1985_v9, %v1841_v21  ;;  %v992_v26 = vmax.f32 %v854_v22, 0.0 }
 0x218   : > { %v1073_v27 = vadd.f32 %v1072_v11, %v991_v24 }
 0x219   : > { %v1136_v28 = vadd.f32 %v1135_v12, %v992_v26  ;;  %v1535_v29 = vpop.f32.mrf.mxu2 }
 0x21a   : > { %v1536_v30 = vadd.f32 %v1535_v29, %v2782_v5  ;;  %v1704_v31 = vpop.f32.mrf.mxu3 }
 0x21b   : > { %v1705_v34 = vadd.f32 %v1704_v31, %v2784_v6  ;;  %v687_v35 = vpop.f32.mrf.mxu0 }
 0x21c   : > { %v1842_v36 = vmax.f32 %v1536_v30, 0.0  ;;  %v688_v37 = vadd.f32 %v687_v35, %v2782_v5  ;;  %v856_v38 = vpop.f32.mrf.mxu1 }
 0x21d   : > { %v1843_v39 = vmax.f32 %v1705_v34, 0.0  ;;  %v857_v40 = vadd.f32 %v856_v38, %v2784_v6 }
 0x21e   : > { %v1924_v41 = vadd.f32 %v1923_v23, %v1842_v36  ;;  %v993_v42 = vmax.f32 %v688_v37, 0.0  ;;  %726 = vmatmul.bf16.gmra.mxu0 %v2534_v32  ;;  %1577 = vmatmul.bf16.gmra.mxu2 %v2566_v33 }
 0x21f   : > { %v1987_v43 = vadd.f32 %v1986_v25, %v1843_v39  ;;  %v994_v44 = vmax.f32 %v857_v40, 0.0  ;;  %895 = vmatmul.bf16.gmra.mxu1 %v2534_v32  ;;  %1746 = vmatmul.bf16.gmra.mxu3 %v2566_v33 }
 0x220   : > { %v1074_v45 = vadd.f32 %v1073_v27, %v993_v42 }
 0x221   : > { %v1137_v46 = vadd.f32 %v1136_v28, %v994_v44  ;;  %v1538_v47 = vpop.f32.mrf.mxu2 }
 0x222   : > { %v1539_v48 = vadd.f32 %v1538_v47, %v2782_v5  ;;  %v1707_v49 = vpop.f32.mrf.mxu3 }
 0x223   : > { %v1708_v50 = vadd.f32 %v1707_v49, %v2784_v6  ;;  %v689_v51 = vpop.f32.mrf.mxu0 }
 0x224   : > { %v1844_v52 = vmax.f32 %v1539_v48, 0.0  ;;  %v690_v53 = vadd.f32 %v689_v51, %v2782_v5  ;;  %v858_v54 = vpop.f32.mrf.mxu1 }
 0x225   : > { %v1845_v55 = vmax.f32 %v1708_v50, 0.0  ;;  %v859_v56 = vadd.f32 %v858_v54, %v2784_v6 }
 0x226   : > { %v1925_v57 = vadd.f32 %v1924_v41, %v1844_v52  ;;  %v995_v58 = vmax.f32 %v690_v53, 0.0 }
 0x227   : > { %v1988_v59 = vadd.f32 %v1987_v43, %v1845_v55  ;;  %v996_v60 = vmax.f32 %v859_v56, 0.0 }
 0x228   : > { %v1075_v61 = vadd.f32 %v1074_v45, %v995_v58 }
 0x229   : > { %v1138_v62 = vadd.f32 %v1137_v46, %v996_v60  ;;  %v1540_v63 = vpop.f32.mrf.mxu2 }
 0x22a   : > { %v1541_v0 = vadd.f32 %v1540_v63, %v2782_v5  ;;  %v1709_v1 = vpop.f32.mrf.mxu3 }
 0x22b   : > { %v1710_v2 = vadd.f32 %v1709_v1, %v2784_v6  ;;  %v692_v3 = vpop.f32.mrf.mxu0 }
 0x22c   : > { %v1846_v4 = vmax.f32 %v1541_v0, 0.0  ;;  %v693_v7 = vadd.f32 %v692_v3, %v2782_v5  ;;  %v861_v8 = vpop.f32.mrf.mxu1 }
 0x22d   : > { %v1847_v9 = vmax.f32 %v1710_v2, 0.0  ;;  %v862_v10 = vadd.f32 %v861_v8, %v2784_v6 }
 0x22e   : > { %v1926_v11 = vadd.f32 %v1925_v57, %v1846_v4  ;;  %v997_v12 = vmax.f32 %v693_v7, 0.0 }
 0x22f   : > { %v1989_v13 = vadd.f32 %v1988_v59, %v1847_v9  ;;  %v998_v14 = vmax.f32 %v862_v10, 0.0 }
 0x230   : > { %v1076_v15 = vadd.f32 %v1075_v61, %v997_v12 }
 0x231   : > { %v1139_v16 = vadd.f32 %v1138_v62, %v998_v14  ;;  %v1543_v17 = vpop.f32.mrf.mxu2 }
 0x232   : > { %v1544_v18 = vadd.f32 %v1543_v17, %v2782_v5  ;;  %v1712_v19 = vpop.f32.mrf.mxu3 }
 0x233   : > { %v1713_v20 = vadd.f32 %v1712_v19, %v2784_v6  ;;  %v694_v21 = vpop.f32.mrf.mxu0 }
 0x234   : > { %v1848_v22 = vmax.f32 %v1544_v18, 0.0  ;;  %v695_v23 = vadd.f32 %v694_v21, %v2782_v5  ;;  %v863_v24 = vpop.f32.mrf.mxu1 }
 0x235   : > { %v1849_v25 = vmax.f32 %v1713_v20, 0.0  ;;  %v864_v26 = vadd.f32 %v863_v24, %v2784_v6 }
 0x236   : > { %v1927_v27 = vadd.f32 %v1926_v11, %v1848_v22  ;;  %v999_v28 = vmax.f32 %v695_v23, 0.0 }
 0x237   : > { %v1990_v29 = vadd.f32 %v1989_v13, %v1849_v25  ;;  %v1000_v30 = vmax.f32 %v864_v26, 0.0 }
 0x238   : > { %v1077_v31 = vadd.f32 %v1076_v15, %v999_v28 }
 0x239   : > { %v1140_v32 = vadd.f32 %v1139_v16, %v1000_v30  ;;  %v1545_v33 = vpop.f32.mrf.mxu2 }
 0x23a   : > { %v1546_v34 = vadd.f32 %v1545_v33, %v2782_v5  ;;  %v1714_v35 = vpop.f32.mrf.mxu3 }
 0x23b   : > { %v1715_v36 = vadd.f32 %v1714_v35, %v2784_v6  ;;  %v697_v37 = vpop.f32.mrf.mxu0 }
 0x23c   : > { %v1850_v38 = vmax.f32 %v1546_v34, 0.0  ;;  %v698_v39 = vadd.f32 %v697_v37, %v2782_v5  ;;  %v866_v40 = vpop.f32.mrf.mxu1 }
 0x23d   : > { %v1851_v41 = vmax.f32 %v1715_v36, 0.0  ;;  %v867_v42 = vadd.f32 %v866_v40, %v2784_v6 }
 0x23e   : > { %v1928_v43 = vadd.f32 %v1927_v27, %v1850_v38  ;;  %v1001_v44 = vmax.f32 %v698_v39, 0.0 }
 0x23f   : > { %v1991_v45 = vadd.f32 %v1990_v29, %v1851_v41  ;;  %v1002_v46 = vmax.f32 %v867_v42, 0.0 }
 0x240   : > { %v1078_v47 = vadd.f32 %v1077_v31, %v1001_v44 }
 0x241   : > { %v1141_v48 = vadd.f32 %v1140_v32, %v1002_v46  ;;  %v1548_v49 = vpop.f32.mrf.mxu2 }
 0x242   : > { %v1549_v50 = vadd.f32 %v1548_v49, %v2782_v5  ;;  %v1717_v51 = vpop.f32.mrf.mxu3 }
 0x243   : > { %v1718_v52 = vadd.f32 %v1717_v51, %v2784_v6  ;;  %v699_v53 = vpop.f32.mrf.mxu0 }
 0x244   : > { %v1852_v54 = vmax.f32 %v1549_v50, 0.0  ;;  %v700_v55 = vadd.f32 %v699_v53, %v2782_v5  ;;  %v868_v56 = vpop.f32.mrf.mxu1 }
 0x245   : > { %v1853_v57 = vmax.f32 %v1718_v52, 0.0  ;;  %v869_v58 = vadd.f32 %v868_v56, %v2784_v6 }
 0x246   : > { %v1929_v59 = vadd.f32 %v1928_v43, %v1852_v54  ;;  %v1003_v60 = vmax.f32 %v700_v55, 0.0 }
 0x247   : > { %v1992_v61 = vadd.f32 %v1991_v45, %v1853_v57  ;;  %v1004_v62 = vmax.f32 %v869_v58, 0.0 }
 0x248   : > { %v1079_v63 = vadd.f32 %v1078_v47, %v1003_v60 }
 0x249   : > { %v1142_v0 = vadd.f32 %v1141_v48, %v1004_v62  ;;  %v1550_v1 = vpop.f32.mrf.mxu2 }
 0x24a   : > { %v1551_v2 = vadd.f32 %v1550_v1, %v2782_v5  ;;  %v1719_v3 = vpop.f32.mrf.mxu3 }
 0x24b   : > { %v1720_v4 = vadd.f32 %v1719_v3, %v2784_v6  ;;  %v702_v7 = vpop.f32.mrf.mxu0 }
 0x24c   : > { %v1854_v8 = vmax.f32 %v1551_v2, 0.0  ;;  %v703_v9 = vadd.f32 %v702_v7, %v2782_v5  ;;  %v871_v10 = vpop.f32.mrf.mxu1 }
 0x24d   : > { %v1855_v11 = vmax.f32 %v1720_v4, 0.0  ;;  %v872_v12 = vadd.f32 %v871_v10, %v2784_v6 }
 0x24e   : > { %v1930_v13 = vadd.f32 %v1929_v59, %v1854_v8  ;;  %v1005_v14 = vmax.f32 %v703_v9, 0.0 }
 0x24f   : > { %v1993_v15 = vadd.f32 %v1992_v61, %v1855_v11  ;;  %v1006_v16 = vmax.f32 %v872_v12, 0.0 }
 0x250   : > { %v1080_v17 = vadd.f32 %v1079_v63, %v1005_v14 }
 0x251   : > { %v1143_v18 = vadd.f32 %v1142_v0, %v1006_v16  ;;  %v1553_v19 = vpop.f32.mrf.mxu2 }
 0x252   : > { %v1554_v20 = vadd.f32 %v1553_v19, %v2782_v5  ;;  %v1722_v21 = vpop.f32.mrf.mxu3 }
 0x253   : > { %v1723_v22 = vadd.f32 %v1722_v21, %v2784_v6  ;;  %v704_v23 = vpop.f32.mrf.mxu0 }
 0x254   : > { %v1856_v24 = vmax.f32 %v1554_v20, 0.0  ;;  %v873_v25 = vpop.f32.mrf.mxu1  ;;  %v705_v54 = vadd.f32 %v704_v23, %v2782_v5 }
 0x255   : > { %v1857_v26 = vmax.f32 %v1723_v22, 0.0  ;;  %v874_v55 = vadd.f32 %v873_v25, %v2784_v6 }
 0x256   : > { %v1931_v27 = vadd.f32 %v1930_v13, %v1856_v24  ;;  %v1007_v1 = vmax.f32 %v705_v54, 0.0 }
 0x257   : > { %v1994_v28 = vadd.f32 %v1993_v15, %v1857_v26  ;;  %v1008_v2 = vmax.f32 %v874_v55, 0.0 }
 0x258   : > { %v1081_v14 = vadd.f32 %v1080_v17, %v1007_v1 }
 0x259   : > { %v1555_v29 = vpop.f32.mrf.mxu2  ;;  %v1144_v15 = vadd.f32 %v1143_v18, %v1008_v2 }
 0x25a   : > { %v1724_v30 = vpop.f32.mrf.mxu3  ;;  %v1556_v57 = vadd.f32 %v1555_v29, %v2782_v5 }
 0x25b   : > { %v707_v31 = vpop.f32.mrf.mxu0  ;;  %v1725_v58 = vadd.f32 %v1724_v30, %v2784_v6 }
 0x25c   : > { %v876_v32 = vpop.f32.mrf.mxu1  ;;  %v708_v60 = vadd.f32 %v707_v31, %v2782_v5  ;;  %v1858_v4 = vmax.f32 %v1556_v57, 0.0 }
 0x25d   : > { %v877_v61 = vadd.f32 %v876_v32, %v2784_v6  ;;  %v1859_v7 = vmax.f32 %v1725_v58, 0.0 }
 0x25e   : > { %v1009_v9 = vmax.f32 %v708_v60, 0.0  ;;  %v1932_v21 = vadd.f32 %v1931_v27, %v1858_v4 }
 0x25f   : > { %v1010_v10 = vmax.f32 %v877_v61, 0.0  ;;  %v1995_v22 = vadd.f32 %v1994_v28, %v1859_v7 }
 0x260   : > { %v1082_v26 = vadd.f32 %v1081_v14, %v1009_v9 }
 0x261   : > { %v1558_v33 = vpop.f32.mrf.mxu2  ;;  %v1145_v29 = vadd.f32 %v1144_v15, %v1010_v10 }
 0x262   : > { %v1727_v34 = vpop.f32.mrf.mxu3  ;;  %v1559_v63 = vadd.f32 %v1558_v33, %v2782_v5 }
 0x263   : > { %v709_v35 = vpop.f32.mrf.mxu0  ;;  %v1728_v0 = vadd.f32 %v1727_v34, %v2784_v6 }
 0x264   : > { %v878_v36 = vpop.f32.mrf.mxu1  ;;  %v710_v3 = vadd.f32 %v709_v35, %v2782_v5  ;;  %v1860_v11 = vmax.f32 %v1559_v63, 0.0 }
 0x265   : > { %v879_v8 = vadd.f32 %v878_v36, %v2784_v6  ;;  %v1861_v12 = vmax.f32 %v1728_v0, 0.0 }
 0x266   : > { %v1011_v16 = vmax.f32 %v710_v3, 0.0  ;;  %v1933_v18 = vadd.f32 %v1932_v21, %v1860_v11 }
 0x267   : > { %v1012_v23 = vmax.f32 %v879_v8, 0.0  ;;  %v1996_v32 = vadd.f32 %v1995_v22, %v1861_v12 }
 0x268   : > { %v1083_v28 = vadd.f32 %v1082_v26, %v1011_v16 }
 0x269   : > { %v1560_v37 = vpop.f32.mrf.mxu2 }
 0x26a   : > { %v1729_v38 = vpop.f32.mrf.mxu3  ;;  %v1561_v19 = vadd.f32 %v1560_v37, %v2782_v5  ;;  %v1146_v37 = vadd.f32 %v1145_v29, %v1012_v23 }
 0x26b   : > { %v712_v39 = vpop.f32.mrf.mxu0  ;;  %v1730_v24 = vadd.f32 %v1729_v38, %v2784_v6 }
 0x26c   : > { %v881_v40 = vpop.f32.mrf.mxu1  ;;  %v713_v30 = vadd.f32 %v712_v39, %v2782_v5  ;;  %v1862_v34 = vmax.f32 %v1561_v19, 0.0 }
 0x26d   : > { %v882_v31 = vadd.f32 %v881_v40, %v2784_v6  ;;  %v1863_v38 = vmax.f32 %v1730_v24, 0.0 }
 0x26e   : > { %v1013_v54 = vmax.f32 %v713_v30, 0.0 }
 0x26f   : > { %v1014_v55 = vmax.f32 %v882_v31, 0.0  ;;  %v1997_v1 = vadd.f32 %v1996_v32, %v1863_v38 }
 0x270   : > { %v1084_v4 = vadd.f32 %v1083_v28, %v1013_v54 }
 0x271   : > { %v1563_v41 = vpop.f32.mrf.mxu2  ;;  %v1147_v7 = vadd.f32 %v1146_v37, %v1014_v55 }
 0x272   : > { %v1732_v42 = vpop.f32.mrf.mxu3  ;;  %v1564_v33 = vadd.f32 %v1563_v41, %v2782_v5 }
 0x273   : > { %v714_v43 = vpop.f32.mrf.mxu0  ;;  %v1733_v27 = vadd.f32 %v1732_v42, %v2784_v6 }
 0x274   : > { %v883_v44 = vpop.f32.mrf.mxu1  ;;  %v715_v35 = vadd.f32 %v714_v43, %v2782_v5  ;;  %v1864_v58 = vmax.f32 %v1564_v33, 0.0 }
 0x275   : > { %v884_v36 = vadd.f32 %v883_v44, %v2784_v6  ;;  %v1865_v42 = vmax.f32 %v1733_v27, 0.0  ;;  %v1934_v44 = vadd.f32 %v1933_v18, %v1862_v34 }
 0x276   : > { %v1015_v63 = vmax.f32 %v715_v35, 0.0 }
 0x277   : > { %v1016_v0 = vmax.f32 %v884_v36, 0.0  ;;  %v1935_v9 = vadd.f32 %v1934_v44, %v1864_v58  ;;  %v1998_v10 = vadd.f32 %v1997_v1, %v1865_v42 }
 0x278   : > { %v1085_v14 = vadd.f32 %v1084_v4, %v1015_v63 }
 0x279   : > { %v1565_v45 = vpop.f32.mrf.mxu2  ;;  %v1148_v15 = vadd.f32 %v1147_v7, %v1016_v0 }
 0x27a   : > { %v1734_v46 = vpop.f32.mrf.mxu3  ;;  %v1566_v39 = vadd.f32 %v1565_v45, %v2782_v5 }
 0x27b   : > { %v717_v47 = vpop.f32.mrf.mxu0  ;;  %v1735_v40 = vadd.f32 %v1734_v46, %v2784_v6 }
 0x27c   : > { %v886_v48 = vpop.f32.mrf.mxu1  ;;  %v718_v57 = vadd.f32 %v717_v47, %v2782_v5  ;;  %v1866_v2 = vmax.f32 %v1566_v39, 0.0 }
 0x27d   : > { %v887_v41 = vadd.f32 %v886_v48, %v2784_v6  ;;  %v1867_v3 = vmax.f32 %v1735_v40, 0.0 }
 0x27e   : > { %v1936_v19 = vadd.f32 %v1935_v9, %v1866_v2 }
 0x27f   : > { %v1018_v8 = vmax.f32 %v887_v41, 0.0  ;;  %v1999_v21 = vadd.f32 %v1998_v10, %v1867_v3 }
 0x281   : > { %v1568_v49 = vpop.f32.mrf.mxu2  ;;  %v1149_v24 = vadd.f32 %v1148_v15, %v1018_v8 }
 0x282   : > { %v1737_v50 = vpop.f32.mrf.mxu3  ;;  %v1569_v60 = vadd.f32 %v1568_v49, %v2782_v5  ;;  %v1017_v49 = vmax.f32 %v718_v57, 0.0 }
 0x283   : > { %v3044_v51 = vpop.f32.mrf.mxu0  ;;  %v1738_v43 = vadd.f32 %v1737_v50, %v2784_v6 }
 0x284   : > { %v3046_v52 = vpop.f32.mrf.mxu1  ;;  %v720_v45 = vadd.f32 %v3044_v51, %v2782_v5  ;;  %v1868_v11 = vmax.f32 %v1569_v60, 0.0  ;;  %v1086_v23 = vadd.f32 %v1085_v14, %v1017_v49 }
 0x285   : > { %v889_v47 = vadd.f32 %v3046_v52, %v2784_v6  ;;  %v1869_v12 = vmax.f32 %v1738_v43, 0.0 }
 0x286   : > { %v1019_v51 = vmax.f32 %v720_v45, 0.0  ;;  %v1937_v30 = vadd.f32 %v1936_v19, %v1868_v11 }
 0x287   : > { %v1020_v22 = vmax.f32 %v889_v47, 0.0  ;;  %v2000_v31 = vadd.f32 %v1999_v21, %v1869_v12 }
 0x288   : > { %v1087_v33 = vadd.f32 %v1086_v23, %v1019_v51 }
 0x289   : > { %v3048_v53 = vpop.f32.mrf.mxu2  ;;  %v1150_v34 = vadd.f32 %v1149_v24, %v1020_v22 }
 0x28a   : > { %v3052_v56 = vpop.f32.mrf.mxu3  ;;  %v1571_v16 = vadd.f32 %v3048_v53, %v2782_v5 }
 0x28b   : > { %v3056_v59 = vpop.f32.mrf.mxu0  ;;  %v1740_v52 = vadd.f32 %v3052_v56, %v2784_v6 }
 0x28c   : > { %v3060_v62 = vpop.f32.mrf.mxu1  ;;  %v723_v26 = vadd.f32 %v3056_v59, %v2782_v5  ;;  %v1870_v27 = vmax.f32 %v1571_v16, 0.0 }
 0x28d   : > { %v892_v18 = vadd.f32 %v3060_v62, %v2784_v6  ;;  %v1871_v35 = vmax.f32 %v1740_v52, 0.0 }
 0x28e   : > { %v1021_v37 = vmax.f32 %v723_v26, 0.0  ;;  %v1938_v41 = vadd.f32 %v1937_v30, %v1870_v27 }
 0x28f   : > { %v1022_v54 = vmax.f32 %v892_v18, 0.0  ;;  %v2001_v60 = vadd.f32 %v2000_v31, %v1871_v35 }
 0x290   : > { %v1088_v63 = vadd.f32 %v1087_v33, %v1021_v37 }
 0x291   : > { %v3066_v13 = vpop.f32.mrf.mxu2  ;;  %v1151_v1 = vadd.f32 %v1150_v34, %v1022_v54 }
 0x292   : > { %v3069_v20 = vpop.f32.mrf.mxu3  ;;  %v1574_v29 = vadd.f32 %v3066_v13, %v2782_v5 }
 0x293   : > { %v3072_v25 = vpop.f32.mrf.mxu0  ;;  %v1743_v53 = vadd.f32 %v3069_v20, %v2784_v6 }
 0x294   : > { %v3076_v17 = vpop.f32.mrf.mxu1  ;;  %v725_v56 = vadd.f32 %v3072_v25, %v2782_v5  ;;  %v1872_v38 = vmax.f32 %v1574_v29, 0.0 }
 0x295   : > { %v894_v13 = vadd.f32 %v3076_v17, %v2784_v6  ;;  %v1873_v25 = vmax.f32 %v1743_v53, 0.0 }
 0x296   : > { %v1023_v58 = vmax.f32 %v725_v56, 0.0  ;;  %v1939_v0 = vadd.f32 %v1938_v41, %v1872_v38 }
 0x297   : > { %v1024_v43 = vmax.f32 %v894_v13, 0.0  ;;  %v2002_v2 = vadd.f32 %v2001_v60, %v1873_v25 }
 0x298   : > { %v1089_v4 = vadd.f32 %v1088_v63, %v1023_v58 }
 0x299   : > { %v1575_v61 = vpop.f32.mrf.mxu2  ;;  %v1152_v9 = vadd.f32 %v1151_v1, %v1024_v43 }
 0x29a   : > { %v1744_v46 = vpop.f32.mrf.mxu3  ;;  %v1576_v28 = vadd.f32 %v1575_v61, %v2782_v5 }
 0x29b   : > { %v727_v48 = vpop.f32.mrf.mxu0  ;;  %v1745_v36 = vadd.f32 %v1744_v46, %v2784_v6 }
 0x29c   : > { %v896_v50 = vpop.f32.mrf.mxu1  ;;  %v728_v20 = vadd.f32 %v727_v48, %v2782_v5  ;;  %v1874_v42 = vmax.f32 %v1576_v28, 0.0 }
 0x29d   : > { %v897_v55 = vadd.f32 %v896_v50, %v2784_v6  ;;  %v1875_v61 = vmax.f32 %v1745_v36, 0.0 }
 0x29e   : > { %v1025_v45 = vmax.f32 %v728_v20, 0.0  ;;  %v1940_v7 = vadd.f32 %v1939_v0, %v1874_v42 }
 0x29f   : > { %v1026_v3 = vmax.f32 %v897_v55, 0.0  ;;  %v2003_v10 = vadd.f32 %v2002_v2, %v1875_v61 }
 0x2a0   : > { %v1090_v14 = vadd.f32 %v1089_v4, %v1025_v45 }
 0x2a1   : > { %v1578_v32 = vpop.f32.mrf.mxu2  ;;  %v1153_v16 = vadd.f32 %v1152_v9, %v1026_v3 }
 0x2a2   : > { %v1747_v59 = vpop.f32.mrf.mxu3  ;;  %v1579_v39 = vadd.f32 %v1578_v32, %v2782_v5 }
 0x2a3   : > { %v729_v62 = vpop.f32.mrf.mxu0  ;;  %v1748_v57 = vadd.f32 %v1747_v59, %v2784_v6 }
 0x2a4   : > { %v898_v40 = vpop.f32.mrf.mxu1  ;;  %v730_v17 = vadd.f32 %v729_v62, %v2782_v5  ;;  %v1876_v46 = vmax.f32 %v1579_v39, 0.0 }
 0x2a5   : > { %v899_v44 = vadd.f32 %v898_v40, %v2784_v6  ;;  %v1877_v47 = vmax.f32 %v1748_v57, 0.0 }
 0x2a6   : > { %v1027_v49 = vmax.f32 %v730_v17, 0.0  ;;  %v1941_v15 = vadd.f32 %v1940_v7, %v1876_v46 }
 0x2a7   : > { %v1028_v11 = vmax.f32 %v899_v44, 0.0  ;;  %v2004_v19 = vadd.f32 %v2003_v10, %v1877_v47 }
 0x2a8   : > { %v1091_v22 = vadd.f32 %v1090_v14, %v1027_v49 }
 0x2a9   : > { %v1580_v48 = vpop.f32.mrf.mxu2  ;;  %v1154_v23 = vadd.f32 %v1153_v16, %v1028_v11 }
 0x2aa   : > { %v1581_v8 = vadd.f32 %v1580_v48, %v2782_v5  ;;  %v1749_v50 = vpop.f32.mrf.mxu3 }
 0x2ab   : > { %v1750_v12 = vadd.f32 %v1749_v50, %v2784_v6 }
 0x2ac   : > { %v1878_v51 = vmax.f32 %v1581_v8, 0.0 }
 0x2ad   : > { %v1879_v21 = vmax.f32 %v1750_v12, 0.0 }
 0x2ae   : > { %v1942_v52 = vadd.f32 %v1941_v15, %v1878_v51 }
 0x2af   : > { %v2005_v5 = vadd.f32 %v2004_v19, %v1879_v21 }
 0x2b0   : > { %v2006_v24 = vadd.f32 %v1942_v52, %v1091_v22 }
 0x2b1   : > { %v2007_v26 = vadd.f32 %v2005_v5, %v1154_v23 }
 0x2b2   : > { %2019 = vst [vmem:[%s198_s20] sm:$0xff] %v2006_v24 }
 0x2b3   : > { %2020 = vst [vmem:[%s198_s20 + $0x8] sm:$0xff] %v2007_v26 }
 0x2b4 PF: > { %s13_s14 = sadd.s32 1, %s2613_s14   ;;  %s3135_s12 = smov %s2609_s13 }
 0x2b5   : > { %p10_p5 = scmp.ge.s32.totalorder %s13_s14, 4   ;;  %s3136_s13 = smov %s3138_s15 }
 0x2b7   :  { %12 = sbr.rel (!%p10_p5) target bundleno = 2 (0x2), region = 71 }

</bundles_post_ra>
